<compile_context>
chip_gen: v7x
topology: tpu7x:2x2x1
jax: 0.10.0
libtpu: 0.0.40
codegen_flags: <defaults>
</compile_context>

<pallas_src>
import jax
import jax.numpy as jnp
from jax import lax
from jax.experimental import pallas as pl
from jax.experimental.pallas import tpu as pltpu


def _rnn_seq_kernel(h0_ref, pre_ref, w12h_ref, w3_ref, b3_ref, out_ref, h_scratch):
    """One grid step = Tb timesteps of the RNN cell (grid axis 0 = time blocks).

    h0_ref  : (Bp, Hp)  f32     initial hidden (read only at grid step 0)
    pre_ref : (Tb, Bp, Hp+Op) f32   hoisted input projection (+ b12) per step
    w12h_ref: (Hp, Hp+Op) bf16  packed [W_i2h | W_i2o] rows acting on hidden
    w3_ref  : (Hp+Op, Op) bf16  o2o weight on the padded [hidden | output] layout
    b3_ref  : (1, Op)  f32      o2o bias (-1e30 in padded logit columns)
    out_ref : (Tb, Bp, Hp+Op) f32   per-step [hidden | log-softmax] block
    h_scratch: (Bp, Hp) VMEM f32    hidden state carried across grid steps
    """
    @pl.when(pl.program_id(0) == 0)
    def _():
        h_scratch[...] = h0_ref[...]

    tb = pre_ref.shape[0]
    bp, hp = h_scratch.shape
    op = b3_ref.shape[1]

    # Hoisted (per-grid-step, not per-timestep) weight loads / bias broadcast.
    w12h = w12h_ref[...]                                   # (Hp, Hp+Op) bf16
    w3 = w3_ref[...]                                       # (Hp+Op, Op) bf16
    b3 = jnp.broadcast_to(b3_ref[...], (bp, op))           # (Bp, Op) f32

    def step(i, h_prev):
        # ho = [i2h(x) | i2o(x)]: input/category part precomputed in `pre`,
        # only the recurrent contribution stays on the serial chain.
        ho = pre_ref[i] + jnp.dot(h_prev.astype(jnp.bfloat16), w12h,
                                  preferred_element_type=jnp.float32)
        h_new = ho[:, :hp]                                 # (Bp, Hp)

        # o2o(cat(hidden, output)): ho IS that concat -> a single matmul.
        out2 = jnp.dot(ho.astype(jnp.bfloat16), w3,
                       preferred_element_type=jnp.float32) + b3

        # Dropout(p=0.1): eval-mode identity.
        # LogSoftmax(dim=1); padded columns carry -1e30 bias -> exp underflows to 0.
        m = jnp.max(out2, axis=1, keepdims=True)
        shifted = out2 - m
        lse = jnp.log(jnp.sum(jnp.exp(shifted), axis=1, keepdims=True))

        out_ref[i] = jnp.concatenate([h_new, shifted - lse], axis=1)
        return h_new

    h_final = lax.fori_loop(0, tb, step, h_scratch[...], unroll=True)
    h_scratch[...] = h_final


def _pack_padded_params(params, K, I, H, O, Hp, Op):
    """Split + fuse + zero-pad the PyTorch-layout (in, out) weights.

    Returns:
      w12ki : (K+I, Hp+Op) f32   packed [W_i2h | W_i2o] rows acting on cat+input
      b12   : (1,   Hp+Op) f32   packed [b_i2h | b_i2o]
      w12h  : (Hp,  Hp+Op) bf16  packed rows acting on hidden (zero-padded)
      w3p   : (Hp+Op, Op) bf16   o2o weight on the padded [hidden | output] layout
      b3p   : (1, Op) f32        o2o bias, -1e30 in padded columns
    """
    w1, b1 = params["w_i2h"], params["b_i2h"]     # (K+I+H, H), (1, H)
    w2, b2 = params["w_i2o"], params["b_i2o"]     # (K+I+H, O), (1, O)
    w3, b3 = params["w_o2o"], params["b_o2o"]     # (H+O,  O), (1, O)

    def fuse_cols(a, b):       # a: (r, H), b: (r, O) -> (r, Hp+Op), zero padded
        out = jnp.zeros((a.shape[0], Hp + Op), jnp.float32)
        out = out.at[:, :H].set(a)
        out = out.at[:, Hp:Hp + O].set(b)
        return out

    w12ki = fuse_cols(w1[:K + I], w2[:K + I])                      # (K+I, Hp+Op)
    b12 = fuse_cols(b1, b2)                                        # (1,   Hp+Op)
    w12h = jnp.zeros((Hp, Hp + Op), jnp.float32)
    w12h = w12h.at[:H].set(fuse_cols(w1[K + I:], w2[K + I:]))      # (Hp,  Hp+Op)

    # o2o: first H input rows act on hidden, last O on output -> padded layout.
    w3p = jnp.zeros((Hp + Op, Op), jnp.float32)
    w3p = w3p.at[:H, :O].set(w3[:H])
    w3p = w3p.at[Hp:Hp + O, :O].set(w3[H:])
    b3p = jnp.full((1, Op), -1e30, jnp.float32).at[:, :O].set(b3)

    return (w12ki, b12,
            w12h.astype(jnp.bfloat16), w3p.astype(jnp.bfloat16), b3p)


@jax.jit
def rnn_sequence_forward(category_seq, input_seq, hidden0, params):
    """Fused T-step forward.

    Per step t:  out[t], hid[t] = RNN.forward(category_seq[t], input_seq[t], h_{t-1})
    with h_{-1} = hidden0.  Returns (outputs (T,B,O), hidden states (T,B,H)).
    """
    T, B, K = category_seq.shape
    I = input_seq.shape[2]
    H = params["w_i2h"].shape[1]
    O = params["w_i2o"].shape[1]

    Bp = ((B + 7) // 8) * 8               # f32 sublane multiple
    Hp = ((H + 127) // 128) * 128         # full-lane hidden width
    Op = ((O + 127) // 128) * 128         # full-lane logit width
    F = Hp + Op                           # merged [hidden | logits] feature width

    Tb = min(T, 32)                       # time block (VMEM ~ 4*Tb*Bp*F*4B << limit)
    Tp = ((T + Tb - 1) // Tb) * Tb

    w12ki, b12, w12h_bf, w3p_bf, b3p = _pack_padded_params(params, K, I, H, O, Hp, Op)

    # Hoisted time-parallel input projection: one big lane-dense XLA matmul.
    x = jnp.concatenate([category_seq, input_seq], axis=2)          # (T, B, K+I)
    pre = jnp.einsum("tbf,fg->tbg", x, w12ki) + b12                 # (T, B, F) f32
    pre_p = jnp.zeros((Tp, Bp, F), jnp.float32).at[:T, :B].set(pre)

    h0_p = jnp.zeros((Bp, Hp), jnp.float32).at[:B, :H].set(hidden0)

    out_p = pl.pallas_call(
        _rnn_seq_kernel,
        out_shape=jax.ShapeDtypeStruct((Tp, Bp, F), jnp.float32),
        grid=(Tp // Tb,),
        in_specs=[
            pl.BlockSpec((Bp, Hp), lambda t: (0, 0)),       # initial hidden
            pl.BlockSpec((Tb, Bp, F), lambda t: (t, 0, 0)),  # hoisted input proj
            pl.BlockSpec((Hp, F), lambda t: (0, 0)),        # recurrent weight (bf16)
            pl.BlockSpec((F, Op), lambda t: (0, 0)),        # o2o weight (bf16)
            pl.BlockSpec((1, Op), lambda t: (0, 0)),        # o2o bias (+sentinel)
        ],
        out_specs=pl.BlockSpec((Tb, Bp, F), lambda t: (t, 0, 0)),
        scratch_shapes=[pltpu.VMEM((Bp, Hp), jnp.float32)],
        compiler_params=pltpu.CompilerParams(
            dimension_semantics=("arbitrary",)),   # recurrence: time is sequential
    )(h0_p, pre_p, w12h_bf, w3p_bf, b3p)

    hid = out_p[:T, :B, :H]
    out = out_p[:T, :B, Hp:Hp + O]
    return out, hid


def rnn_forward(category, inp, hidden, params):
    """Single-step API parity with RNN.forward(category, input, hidden)."""
    out, hid = rnn_sequence_forward(category[None], inp[None], hidden, params)
    return out[0], hid[0]


def init_params(key, input_size, hidden_size, output_size, num_of_all_kinds):
    """Deterministic PyTorch-Linear-style init; weights stored as (in, out)."""
    d1 = num_of_all_kinds + input_size + hidden_size   # i2h / i2o fan-in
    d3 = hidden_size + output_size                     # o2o fan-in

    def linear(k, fan_in, fan_out):
        kw, kb = jax.random.split(k)
        bound = 1.0 / jnp.sqrt(fan_in)
        w = jax.random.uniform(kw, (fan_in, fan_out), jnp.float32, -bound, bound)
        b = jax.random.uniform(kb, (1, fan_out), jnp.float32, -bound, bound)
        return w, b

    k1, k2, k3 = jax.random.split(key, 3)
    w_i2h, b_i2h = linear(k1, d1, hidden_size)
    w_i2o, b_i2o = linear(k2, d1, output_size)
    w_o2o, b_o2o = linear(k3, d3, output_size)
    return dict(w_i2h=w_i2h, b_i2h=b_i2h,
                w_i2o=w_i2o, b_i2o=b_i2o,
                w_o2o=w_o2o, b_o2o=b_o2o)


def _reference_step(category, inp, hidden, params):
    """Pure-JAX (f32) reference of one RNN.forward call."""
    x = jnp.concatenate([category, inp, hidden], axis=1)
    h = x @ params["w_i2h"] + params["b_i2h"]
    o = x @ params["w_i2o"] + params["b_i2o"]
    oc = jnp.concatenate([h, o], axis=1)
    o2 = oc @ params["w_o2o"] + params["b_o2o"]
    return jax.nn.log_softmax(o2, axis=1), h


def _reference_sequence(cat_seq, inp_seq, h0, params):
    h = h0
    outs, hids = [], []
    for t in range(cat_seq.shape[0]):
        o, h = _reference_step(cat_seq[t], inp_seq[t], h, params)
        outs.append(o)
        hids.append(h)
    return jnp.stack(outs), jnp.stack(hids)


if __name__ == "__main__":
    # Small, forward-consistent shapes.
    seq_len = 8
    batch = 2
    num_of_all_kinds = 8    # number of categories (one-hot size)
    input_size = 16         # e.g. character one-hot size
    hidden_size = 32
    output_size = 16

    key = jax.random.PRNGKey(0)
    kp, kc, ki = jax.random.split(key, 3)

    params = init_params(kp, input_size, hidden_size, output_size, num_of_all_kinds)

    category_seq = jax.random.normal(kc, (seq_len, batch, num_of_all_kinds), jnp.float32)
    input_seq = jax.random.normal(ki, (seq_len, batch, input_size), jnp.float32)
    hidden0 = jnp.zeros((batch, hidden_size), jnp.float32)   # initHidden()

    outs, hids = rnn_sequence_forward(category_seq, input_seq, hidden0, params)
    outs = jax.block_until_ready(outs)
    hids = jax.block_until_ready(hids)

    assert outs.shape == (seq_len, batch, output_size)
    assert hids.shape == (seq_len, batch, hidden_size)

    # Reference is pure f32; kernel uses bf16 MXU operands on the recurrence,
    # so compare with a bf16-appropriate tolerance.
    ref_outs, ref_hids = _reference_sequence(category_seq, input_seq, hidden0, params)
    assert jnp.allclose(outs, ref_outs, atol=3e-2, rtol=3e-2), \
        float(jnp.max(jnp.abs(outs - ref_outs)))
    assert jnp.allclose(hids, ref_hids, atol=3e-2, rtol=3e-2), \
        float(jnp.max(jnp.abs(hids - ref_hids)))

    # Single-step wrapper parity with the PyTorch module signature.
    out1, hid1 = rnn_forward(category_seq[0], input_seq[0], hidden0, params)
    out1 = jax.block_until_ready(out1)
    ref_o1, ref_h1 = _reference_step(category_seq[0], input_seq[0], hidden0, params)
    assert jnp.allclose(out1, ref_o1, atol=3e-2, rtol=3e-2)
    assert jnp.allclose(hid1, ref_h1, atol=3e-2, rtol=3e-2)

    print("KERNEL_OK")
</pallas_src>

<mosaic_0001>
module attributes {stable_mosaic.version = 11 : i64} {
  func.func @_rnn_seq_kernel(%arg0: i32, %arg1: memref<8x128xf32, #tpu.memory_space<vmem>>, %arg2: memref<8x8x256xf32, #tpu.memory_space<vmem>>, %arg3: memref<128x256xbf16, #tpu.memory_space<vmem>>, %arg4: memref<256x128xbf16, #tpu.memory_space<vmem>>, %arg5: memref<1x128xf32, #tpu.memory_space<vmem>>, %arg6: memref<8x8x256xf32, #tpu.memory_space<vmem>>, %arg7: memref<8x128xf32, #tpu.memory_space<vmem>>) attributes {dimension_semantics = [#tpu.dimension_semantics<arbitrary>], iteration_bounds = array<i64: 1>, scalar_prefetch = 0 : i64, scratch_operands = 1 : i64, tpu.core_type = #tpu.core_type<tc>, window_params = [{pipeline_mode = #tpu.pipeline_mode<synchronous>, transform_indices = @transform_0, window_bounds = array<i64: 8, 128>}, {transform_indices = @transform_1, window_bounds = array<i64: 8, 8, 256>}, {pipeline_mode = #tpu.pipeline_mode<synchronous>, transform_indices = @transform_2, window_bounds = array<i64: 128, 256>}, {pipeline_mode = #tpu.pipeline_mode<synchronous>, transform_indices = @transform_3, window_bounds = array<i64: 256, 128>}, {pipeline_mode = #tpu.pipeline_mode<synchronous>, transform_indices = @transform_4, window_bounds = array<i64: 1, 128>}, {transform_indices = @transform_5, window_bounds = array<i64: 8, 8, 256>}]} {
    %c0_i32 = arith.constant 0 : i32
    %0 = arith.cmpi eq, %arg0, %c0_i32 : i32
    %1 = arith.extui %0 : i1 to i32
    %c0_i32_0 = arith.constant 0 : i32
    %2 = arith.cmpi ne, %1, %c0_i32_0 : i32
    scf.if %2 {
      %c0_74 = arith.constant 0 : index
      %c0_75 = arith.constant 0 : index
      %210 = vector.load %arg1[%c0_74, %c0_75] : memref<8x128xf32, #tpu.memory_space<vmem>>, vector<8x128xf32>
      %c0_76 = arith.constant 0 : index
      %c0_77 = arith.constant 0 : index
      %211 = vector.load %arg7[%c0_76, %c0_77] : memref<8x128xf32, #tpu.memory_space<vmem>>, vector<8x128xf32>
      tpu.vector_store %arg7[%c0_76, %c0_77], %210 {strides = array<i32>} : memref<8x128xf32, #tpu.memory_space<vmem>>, vector<8x128xf32>,
    } else {
    }
    %c0 = arith.constant 0 : index
    %c0_1 = arith.constant 0 : index
    %3 = vector.load %arg3[%c0, %c0_1] : memref<128x256xbf16, #tpu.memory_space<vmem>>, vector<128x256xbf16>
    %c0_2 = arith.constant 0 : index
    %c0_3 = arith.constant 0 : index
    %4 = vector.load %arg4[%c0_2, %c0_3] : memref<256x128xbf16, #tpu.memory_space<vmem>>, vector<256x128xbf16>
    %c0_4 = arith.constant 0 : index
    %c0_5 = arith.constant 0 : index
    %5 = vector.load %arg5[%c0_4, %c0_5] : memref<1x128xf32, #tpu.memory_space<vmem>>, vector<1x128xf32>
    %6 = vector.shape_cast %5 : vector<1x128xf32> to vector<1x128xf32>
    %7 = vector.broadcast %6 : vector<1x128xf32> to vector<8x128xf32>
    %c0_6 = arith.constant 0 : index
    %c0_7 = arith.constant 0 : index
    %8 = vector.load %arg7[%c0_6, %c0_7] : memref<8x128xf32, #tpu.memory_space<vmem>>, vector<8x128xf32>
    %c0_i32_8 = arith.constant 0 : i32
    %9 = arith.index_cast %c0_i32_8 : i32 to index
    %c0_9 = arith.constant 0 : index
    %c0_10 = arith.constant 0 : index
    %10 = vector.load %arg2[%9, %c0_9, %c0_10] : memref<8x8x256xf32, #tpu.memory_space<vmem>>, vector<1x8x256xf32>
    %11 = vector.shape_cast %10 : vector<1x8x256xf32> to vector<8x256xf32>
    %12 = arith.truncf %8 : vector<8x128xf32> to vector<8x128xbf16>
    %cst = arith.constant dense<0.000000e+00> : vector<8x256xf32>
    %13 = tpu.matmul %12, %3, %cst {dimension_numbers = #tpu.dot_dimension_numbers<[1], [0], [0], [1], [0, 0, 1, 1], [], []>} : vector<8x128xbf16>, vector<128x256xbf16>, vector<8x256xf32> -> vector<8x256xf32>
    %14 = arith.addf %11, %13 : vector<8x256xf32>
    %15 = vector.extract_strided_slice %14 {offsets = [0, 0], sizes = [8, 128], strides = [1, 1]} : vector<8x256xf32> to vector<8x128xf32>
    %16 = arith.truncf %14 : vector<8x256xf32> to vector<8x256xbf16>
    %cst_11 = arith.constant dense<0.000000e+00> : vector<8x128xf32>
    %17 = tpu.matmul %16, %4, %cst_11 {dimension_numbers = #tpu.dot_dimension_numbers<[1], [0], [0], [1], [0, 0, 1, 1], [], []>} : vector<8x256xbf16>, vector<256x128xbf16>, vector<8x128xf32> -> vector<8x128xf32>
    %18 = arith.addf %17, %7 : vector<8x128xf32>
    %cst_12 = arith.constant dense<0xFF800000> : vector<8xf32>
    %19 = vector.multi_reduction <maximumf>, %18, %cst_12 [1] : vector<8x128xf32> to vector<8xf32>
    %20 = vector.shape_cast %19 : vector<8xf32> to vector<8x1xf32>
    %21 = vector.broadcast %20 : vector<8x1xf32> to vector<8x128xf32>
    %22 = arith.subf %18, %21 : vector<8x128xf32>
    %23 = math.exp %22 : vector<8x128xf32>
    %cst_13 = arith.constant dense<0.000000e+00> : vector<8xf32>
    %24 = vector.multi_reduction <add>, %23, %cst_13 [1] : vector<8x128xf32> to vector<8xf32>
    %25 = vector.shape_cast %24 : vector<8xf32> to vector<8x1xf32>
    %26 = math.log %25 : vector<8x1xf32>
    %27 = vector.broadcast %26 : vector<8x1xf32> to vector<8x128xf32>
    %28 = arith.subf %22, %27 : vector<8x128xf32>
    %29 = tpu.concatenate %15, %28 in 1 : vector<8x128xf32>, vector<8x128xf32> -> vector<8x256xf32>
    %30 = arith.index_cast %c0_i32_8 : i32 to index
    %c0_14 = arith.constant 0 : index
    %c0_15 = arith.constant 0 : index
    %31 = vector.load %arg6[%30, %c0_14, %c0_15] : memref<8x8x256xf32, #tpu.memory_space<vmem>>, vector<1x8x256xf32>
    %32 = vector.shape_cast %31 : vector<1x8x256xf32> to vector<8x256xf32>
    %33 = vector.shape_cast %29 : vector<8x256xf32> to vector<1x8x256xf32>
    tpu.vector_store %arg6[%30, %c0_14, %c0_15], %33 {strides = array<i32>} : memref<8x8x256xf32, #tpu.memory_space<vmem>>, vector<1x8x256xf32>,
    %c1_i32 = arith.constant 1 : i32
    %34 = arith.index_cast %c1_i32 : i32 to index
    %c0_16 = arith.constant 0 : index
    %c0_17 = arith.constant 0 : index
    %35 = vector.load %arg2[%34, %c0_16, %c0_17] : memref<8x8x256xf32, #tpu.memory_space<vmem>>, vector<1x8x256xf32>
    %36 = vector.shape_cast %35 : vector<1x8x256xf32> to vector<8x256xf32>
    %37 = arith.truncf %15 : vector<8x128xf32> to vector<8x128xbf16>
    %cst_18 = arith.constant dense<0.000000e+00> : vector<8x256xf32>
    %38 = tpu.matmul %37, %3, %cst_18 {dimension_numbers = #tpu.dot_dimension_numbers<[1], [0], [0], [1], [0, 0, 1, 1], [], []>} : vector<8x128xbf16>, vector<128x256xbf16>, vector<8x256xf32> -> vector<8x256xf32>
    %39 = arith.addf %36, %38 : vector<8x256xf32>
    %40 = vector.extract_strided_slice %39 {offsets = [0, 0], sizes = [8, 128], strides = [1, 1]} : vector<8x256xf32> to vector<8x128xf32>
    %41 = arith.truncf %39 : vector<8x256xf32> to vector<8x256xbf16>
    %cst_19 = arith.constant dense<0.000000e+00> : vector<8x128xf32>
    %42 = tpu.matmul %41, %4, %cst_19 {dimension_numbers = #tpu.dot_dimension_numbers<[1], [0], [0], [1], [0, 0, 1, 1], [], []>} : vector<8x256xbf16>, vector<256x128xbf16>, vector<8x128xf32> -> vector<8x128xf32>
    %43 = arith.addf %42, %7 : vector<8x128xf32>
    %cst_20 = arith.constant dense<0xFF800000> : vector<8xf32>
    %44 = vector.multi_reduction <maximumf>, %43, %cst_20 [1] : vector<8x128xf32> to vector<8xf32>
    %45 = vector.shape_cast %44 : vector<8xf32> to vector<8x1xf32>
    %46 = vector.broadcast %45 : vector<8x1xf32> to vector<8x128xf32>
    %47 = arith.subf %43, %46 : vector<8x128xf32>
    %48 = math.exp %47 : vector<8x128xf32>
    %cst_21 = arith.constant dense<0.000000e+00> : vector<8xf32>
    %49 = vector.multi_reduction <add>, %48, %cst_21 [1] : vector<8x128xf32> to vector<8xf32>
    %50 = vector.shape_cast %49 : vector<8xf32> to vector<8x1xf32>
    %51 = math.log %50 : vector<8x1xf32>
    %52 = vector.broadcast %51 : vector<8x1xf32> to vector<8x128xf32>
    %53 = arith.subf %47, %52 : vector<8x128xf32>
    %54 = tpu.concatenate %40, %53 in 1 : vector<8x128xf32>, vector<8x128xf32> -> vector<8x256xf32>
    %55 = arith.index_cast %c1_i32 : i32 to index
    %c0_22 = arith.constant 0 : index
    %c0_23 = arith.constant 0 : index
    %56 = vector.load %arg6[%55, %c0_22, %c0_23] : memref<8x8x256xf32, #tpu.memory_space<vmem>>, vector<1x8x256xf32>
    %57 = vector.shape_cast %56 : vector<1x8x256xf32> to vector<8x256xf32>
    %58 = vector.shape_cast %54 : vector<8x256xf32> to vector<1x8x256xf32>
    tpu.vector_store %arg6[%55, %c0_22, %c0_23], %58 {strides = array<i32>} : memref<8x8x256xf32, #tpu.memory_space<vmem>>, vector<1x8x256xf32>,
    %c2_i32 = arith.constant 2 : i32
    %59 = arith.index_cast %c2_i32 : i32 to index
    %c0_24 = arith.constant 0 : index
    %c0_25 = arith.constant 0 : index
    %60 = vector.load %arg2[%59, %c0_24, %c0_25] : memref<8x8x256xf32, #tpu.memory_space<vmem>>, vector<1x8x256xf32>
    %61 = vector.shape_cast %60 : vector<1x8x256xf32> to vector<8x256xf32>
    %62 = arith.truncf %40 : vector<8x128xf32> to vector<8x128xbf16>
    %cst_26 = arith.constant dense<0.000000e+00> : vector<8x256xf32>
    %63 = tpu.matmul %62, %3, %cst_26 {dimension_numbers = #tpu.dot_dimension_numbers<[1], [0], [0], [1], [0, 0, 1, 1], [], []>} : vector<8x128xbf16>, vector<128x256xbf16>, vector<8x256xf32> -> vector<8x256xf32>
    %64 = arith.addf %61, %63 : vector<8x256xf32>
    %65 = vector.extract_strided_slice %64 {offsets = [0, 0], sizes = [8, 128], strides = [1, 1]} : vector<8x256xf32> to vector<8x128xf32>
    %66 = arith.truncf %64 : vector<8x256xf32> to vector<8x256xbf16>
    %cst_27 = arith.constant dense<0.000000e+00> : vector<8x128xf32>
    %67 = tpu.matmul %66, %4, %cst_27 {dimension_numbers = #tpu.dot_dimension_numbers<[1], [0], [0], [1], [0, 0, 1, 1], [], []>} : vector<8x256xbf16>, vector<256x128xbf16>, vector<8x128xf32> -> vector<8x128xf32>
    %68 = arith.addf %67, %7 : vector<8x128xf32>
    %cst_28 = arith.constant dense<0xFF800000> : vector<8xf32>
    %69 = vector.multi_reduction <maximumf>, %68, %cst_28 [1] : vector<8x128xf32> to vector<8xf32>
    %70 = vector.shape_cast %69 : vector<8xf32> to vector<8x1xf32>
    %71 = vector.broadcast %70 : vector<8x1xf32> to vector<8x128xf32>
    %72 = arith.subf %68, %71 : vector<8x128xf32>
    %73 = math.exp %72 : vector<8x128xf32>
    %cst_29 = arith.constant dense<0.000000e+00> : vector<8xf32>
    %74 = vector.multi_reduction <add>, %73, %cst_29 [1] : vector<8x128xf32> to vector<8xf32>
    %75 = vector.shape_cast %74 : vector<8xf32> to vector<8x1xf32>
    %76 = math.log %75 : vector<8x1xf32>
    %77 = vector.broadcast %76 : vector<8x1xf32> to vector<8x128xf32>
    %78 = arith.subf %72, %77 : vector<8x128xf32>
    %79 = tpu.concatenate %65, %78 in 1 : vector<8x128xf32>, vector<8x128xf32> -> vector<8x256xf32>
    %80 = arith.index_cast %c2_i32 : i32 to index
    %c0_30 = arith.constant 0 : index
    %c0_31 = arith.constant 0 : index
    %81 = vector.load %arg6[%80, %c0_30, %c0_31] : memref<8x8x256xf32, #tpu.memory_space<vmem>>, vector<1x8x256xf32>
    %82 = vector.shape_cast %81 : vector<1x8x256xf32> to vector<8x256xf32>
    %83 = vector.shape_cast %79 : vector<8x256xf32> to vector<1x8x256xf32>
    tpu.vector_store %arg6[%80, %c0_30, %c0_31], %83 {strides = array<i32>} : memref<8x8x256xf32, #tpu.memory_space<vmem>>, vector<1x8x256xf32>,
    %c3_i32 = arith.constant 3 : i32
    %84 = arith.index_cast %c3_i32 : i32 to index
    %c0_32 = arith.constant 0 : index
    %c0_33 = arith.constant 0 : index
    %85 = vector.load %arg2[%84, %c0_32, %c0_33] : memref<8x8x256xf32, #tpu.memory_space<vmem>>, vector<1x8x256xf32>
    %86 = vector.shape_cast %85 : vector<1x8x256xf32> to vector<8x256xf32>
    %87 = arith.truncf %65 : vector<8x128xf32> to vector<8x128xbf16>
    %cst_34 = arith.constant dense<0.000000e+00> : vector<8x256xf32>
    %88 = tpu.matmul %87, %3, %cst_34 {dimension_numbers = #tpu.dot_dimension_numbers<[1], [0], [0], [1], [0, 0, 1, 1], [], []>} : vector<8x128xbf16>, vector<128x256xbf16>, vector<8x256xf32> -> vector<8x256xf32>
    %89 = arith.addf %86, %88 : vector<8x256xf32>
    %90 = vector.extract_strided_slice %89 {offsets = [0, 0], sizes = [8, 128], strides = [1, 1]} : vector<8x256xf32> to vector<8x128xf32>
    %91 = arith.truncf %89 : vector<8x256xf32> to vector<8x256xbf16>
    %cst_35 = arith.constant dense<0.000000e+00> : vector<8x128xf32>
    %92 = tpu.matmul %91, %4, %cst_35 {dimension_numbers = #tpu.dot_dimension_numbers<[1], [0], [0], [1], [0, 0, 1, 1], [], []>} : vector<8x256xbf16>, vector<256x128xbf16>, vector<8x128xf32> -> vector<8x128xf32>
    %93 = arith.addf %92, %7 : vector<8x128xf32>
    %cst_36 = arith.constant dense<0xFF800000> : vector<8xf32>
    %94 = vector.multi_reduction <maximumf>, %93, %cst_36 [1] : vector<8x128xf32> to vector<8xf32>
    %95 = vector.shape_cast %94 : vector<8xf32> to vector<8x1xf32>
    %96 = vector.broadcast %95 : vector<8x1xf32> to vector<8x128xf32>
    %97 = arith.subf %93, %96 : vector<8x128xf32>
    %98 = math.exp %97 : vector<8x128xf32>
    %cst_37 = arith.constant dense<0.000000e+00> : vector<8xf32>
    %99 = vector.multi_reduction <add>, %98, %cst_37 [1] : vector<8x128xf32> to vector<8xf32>
    %100 = vector.shape_cast %99 : vector<8xf32> to vector<8x1xf32>
    %101 = math.log %100 : vector<8x1xf32>
    %102 = vector.broadcast %101 : vector<8x1xf32> to vector<8x128xf32>
    %103 = arith.subf %97, %102 : vector<8x128xf32>
    %104 = tpu.concatenate %90, %103 in 1 : vector<8x128xf32>, vector<8x128xf32> -> vector<8x256xf32>
    %105 = arith.index_cast %c3_i32 : i32 to index
    %c0_38 = arith.constant 0 : index
    %c0_39 = arith.constant 0 : index
    %106 = vector.load %arg6[%105, %c0_38, %c0_39] : memref<8x8x256xf32, #tpu.memory_space<vmem>>, vector<1x8x256xf32>
    %107 = vector.shape_cast %106 : vector<1x8x256xf32> to vector<8x256xf32>
    %108 = vector.shape_cast %104 : vector<8x256xf32> to vector<1x8x256xf32>
    tpu.vector_store %arg6[%105, %c0_38, %c0_39], %108 {strides = array<i32>} : memref<8x8x256xf32, #tpu.memory_space<vmem>>, vector<1x8x256xf32>,
    %c4_i32 = arith.constant 4 : i32
    %109 = arith.index_cast %c4_i32 : i32 to index
    %c0_40 = arith.constant 0 : index
    %c0_41 = arith.constant 0 : index
    %110 = vector.load %arg2[%109, %c0_40, %c0_41] : memref<8x8x256xf32, #tpu.memory_space<vmem>>, vector<1x8x256xf32>
    %111 = vector.shape_cast %110 : vector<1x8x256xf32> to vector<8x256xf32>
    %112 = arith.truncf %90 : vector<8x128xf32> to vector<8x128xbf16>
    %cst_42 = arith.constant dense<0.000000e+00> : vector<8x256xf32>
    %113 = tpu.matmul %112, %3, %cst_42 {dimension_numbers = #tpu.dot_dimension_numbers<[1], [0], [0], [1], [0, 0, 1, 1], [], []>} : vector<8x128xbf16>, vector<128x256xbf16>, vector<8x256xf32> -> vector<8x256xf32>
    %114 = arith.addf %111, %113 : vector<8x256xf32>
    %115 = vector.extract_strided_slice %114 {offsets = [0, 0], sizes = [8, 128], strides = [1, 1]} : vector<8x256xf32> to vector<8x128xf32>
    %116 = arith.truncf %114 : vector<8x256xf32> to vector<8x256xbf16>
    %cst_43 = arith.constant dense<0.000000e+00> : vector<8x128xf32>
    %117 = tpu.matmul %116, %4, %cst_43 {dimension_numbers = #tpu.dot_dimension_numbers<[1], [0], [0], [1], [0, 0, 1, 1], [], []>} : vector<8x256xbf16>, vector<256x128xbf16>, vector<8x128xf32> -> vector<8x128xf32>
    %118 = arith.addf %117, %7 : vector<8x128xf32>
    %cst_44 = arith.constant dense<0xFF800000> : vector<8xf32>
    %119 = vector.multi_reduction <maximumf>, %118, %cst_44 [1] : vector<8x128xf32> to vector<8xf32>
    %120 = vector.shape_cast %119 : vector<8xf32> to vector<8x1xf32>
    %121 = vector.broadcast %120 : vector<8x1xf32> to vector<8x128xf32>
    %122 = arith.subf %118, %121 : vector<8x128xf32>
    %123 = math.exp %122 : vector<8x128xf32>
    %cst_45 = arith.constant dense<0.000000e+00> : vector<8xf32>
    %124 = vector.multi_reduction <add>, %123, %cst_45 [1] : vector<8x128xf32> to vector<8xf32>
    %125 = vector.shape_cast %124 : vector<8xf32> to vector<8x1xf32>
    %126 = math.log %125 : vector<8x1xf32>
    %127 = vector.broadcast %126 : vector<8x1xf32> to vector<8x128xf32>
    %128 = arith.subf %122, %127 : vector<8x128xf32>
    %129 = tpu.concatenate %115, %128 in 1 : vector<8x128xf32>, vector<8x128xf32> -> vector<8x256xf32>
    %130 = arith.index_cast %c4_i32 : i32 to index
    %c0_46 = arith.constant 0 : index
    %c0_47 = arith.constant 0 : index
    %131 = vector.load %arg6[%130, %c0_46, %c0_47] : memref<8x8x256xf32, #tpu.memory_space<vmem>>, vector<1x8x256xf32>
    %132 = vector.shape_cast %131 : vector<1x8x256xf32> to vector<8x256xf32>
    %133 = vector.shape_cast %129 : vector<8x256xf32> to vector<1x8x256xf32>
    tpu.vector_store %arg6[%130, %c0_46, %c0_47], %133 {strides = array<i32>} : memref<8x8x256xf32, #tpu.memory_space<vmem>>, vector<1x8x256xf32>,
    %c5_i32 = arith.constant 5 : i32
    %134 = arith.index_cast %c5_i32 : i32 to index
    %c0_48 = arith.constant 0 : index
    %c0_49 = arith.constant 0 : index
    %135 = vector.load %arg2[%134, %c0_48, %c0_49] : memref<8x8x256xf32, #tpu.memory_space<vmem>>, vector<1x8x256xf32>
    %136 = vector.shape_cast %135 : vector<1x8x256xf32> to vector<8x256xf32>
    %137 = arith.truncf %115 : vector<8x128xf32> to vector<8x128xbf16>
    %cst_50 = arith.constant dense<0.000000e+00> : vector<8x256xf32>
    %138 = tpu.matmul %137, %3, %cst_50 {dimension_numbers = #tpu.dot_dimension_numbers<[1], [0], [0], [1], [0, 0, 1, 1], [], []>} : vector<8x128xbf16>, vector<128x256xbf16>, vector<8x256xf32> -> vector<8x256xf32>
    %139 = arith.addf %136, %138 : vector<8x256xf32>
    %140 = vector.extract_strided_slice %139 {offsets = [0, 0], sizes = [8, 128], strides = [1, 1]} : vector<8x256xf32> to vector<8x128xf32>
    %141 = arith.truncf %139 : vector<8x256xf32> to vector<8x256xbf16>
    %cst_51 = arith.constant dense<0.000000e+00> : vector<8x128xf32>
    %142 = tpu.matmul %141, %4, %cst_51 {dimension_numbers = #tpu.dot_dimension_numbers<[1], [0], [0], [1], [0, 0, 1, 1], [], []>} : vector<8x256xbf16>, vector<256x128xbf16>, vector<8x128xf32> -> vector<8x128xf32>
    %143 = arith.addf %142, %7 : vector<8x128xf32>
    %cst_52 = arith.constant dense<0xFF800000> : vector<8xf32>
    %144 = vector.multi_reduction <maximumf>, %143, %cst_52 [1] : vector<8x128xf32> to vector<8xf32>
    %145 = vector.shape_cast %144 : vector<8xf32> to vector<8x1xf32>
    %146 = vector.broadcast %145 : vector<8x1xf32> to vector<8x128xf32>
    %147 = arith.subf %143, %146 : vector<8x128xf32>
    %148 = math.exp %147 : vector<8x128xf32>
    %cst_53 = arith.constant dense<0.000000e+00> : vector<8xf32>
    %149 = vector.multi_reduction <add>, %148, %cst_53 [1] : vector<8x128xf32> to vector<8xf32>
    %150 = vector.shape_cast %149 : vector<8xf32> to vector<8x1xf32>
    %151 = math.log %150 : vector<8x1xf32>
    %152 = vector.broadcast %151 : vector<8x1xf32> to vector<8x128xf32>
    %153 = arith.subf %147, %152 : vector<8x128xf32>
    %154 = tpu.concatenate %140, %153 in 1 : vector<8x128xf32>, vector<8x128xf32> -> vector<8x256xf32>
    %155 = arith.index_cast %c5_i32 : i32 to index
    %c0_54 = arith.constant 0 : index
    %c0_55 = arith.constant 0 : index
    %156 = vector.load %arg6[%155, %c0_54, %c0_55] : memref<8x8x256xf32, #tpu.memory_space<vmem>>, vector<1x8x256xf32>
    %157 = vector.shape_cast %156 : vector<1x8x256xf32> to vector<8x256xf32>
    %158 = vector.shape_cast %154 : vector<8x256xf32> to vector<1x8x256xf32>
    tpu.vector_store %arg6[%155, %c0_54, %c0_55], %158 {strides = array<i32>} : memref<8x8x256xf32, #tpu.memory_space<vmem>>, vector<1x8x256xf32>,
    %c6_i32 = arith.constant 6 : i32
    %159 = arith.index_cast %c6_i32 : i32 to index
    %c0_56 = arith.constant 0 : index
    %c0_57 = arith.constant 0 : index
    %160 = vector.load %arg2[%159, %c0_56, %c0_57] : memref<8x8x256xf32, #tpu.memory_space<vmem>>, vector<1x8x256xf32>
    %161 = vector.shape_cast %160 : vector<1x8x256xf32> to vector<8x256xf32>
    %162 = arith.truncf %140 : vector<8x128xf32> to vector<8x128xbf16>
    %cst_58 = arith.constant dense<0.000000e+00> : vector<8x256xf32>
    %163 = tpu.matmul %162, %3, %cst_58 {dimension_numbers = #tpu.dot_dimension_numbers<[1], [0], [0], [1], [0, 0, 1, 1], [], []>} : vector<8x128xbf16>, vector<128x256xbf16>, vector<8x256xf32> -> vector<8x256xf32>
    %164 = arith.addf %161, %163 : vector<8x256xf32>
    %165 = vector.extract_strided_slice %164 {offsets = [0, 0], sizes = [8, 128], strides = [1, 1]} : vector<8x256xf32> to vector<8x128xf32>
    %166 = arith.truncf %164 : vector<8x256xf32> to vector<8x256xbf16>
    %cst_59 = arith.constant dense<0.000000e+00> : vector<8x128xf32>
    %167 = tpu.matmul %166, %4, %cst_59 {dimension_numbers = #tpu.dot_dimension_numbers<[1], [0], [0], [1], [0, 0, 1, 1], [], []>} : vector<8x256xbf16>, vector<256x128xbf16>, vector<8x128xf32> -> vector<8x128xf32>
    %168 = arith.addf %167, %7 : vector<8x128xf32>
    %cst_60 = arith.constant dense<0xFF800000> : vector<8xf32>
    %169 = vector.multi_reduction <maximumf>, %168, %cst_60 [1] : vector<8x128xf32> to vector<8xf32>
    %170 = vector.shape_cast %169 : vector<8xf32> to vector<8x1xf32>
    %171 = vector.broadcast %170 : vector<8x1xf32> to vector<8x128xf32>
    %172 = arith.subf %168, %171 : vector<8x128xf32>
    %173 = math.exp %172 : vector<8x128xf32>
    %cst_61 = arith.constant dense<0.000000e+00> : vector<8xf32>
    %174 = vector.multi_reduction <add>, %173, %cst_61 [1] : vector<8x128xf32> to vector<8xf32>
    %175 = vector.shape_cast %174 : vector<8xf32> to vector<8x1xf32>
    %176 = math.log %175 : vector<8x1xf32>
    %177 = vector.broadcast %176 : vector<8x1xf32> to vector<8x128xf32>
    %178 = arith.subf %172, %177 : vector<8x128xf32>
    %179 = tpu.concatenate %165, %178 in 1 : vector<8x128xf32>, vector<8x128xf32> -> vector<8x256xf32>
    %180 = arith.index_cast %c6_i32 : i32 to index
    %c0_62 = arith.constant 0 : index
    %c0_63 = arith.constant 0 : index
    %181 = vector.load %arg6[%180, %c0_62, %c0_63] : memref<8x8x256xf32, #tpu.memory_space<vmem>>, vector<1x8x256xf32>
    %182 = vector.shape_cast %181 : vector<1x8x256xf32> to vector<8x256xf32>
    %183 = vector.shape_cast %179 : vector<8x256xf32> to vector<1x8x256xf32>
    tpu.vector_store %arg6[%180, %c0_62, %c0_63], %183 {strides = array<i32>} : memref<8x8x256xf32, #tpu.memory_space<vmem>>, vector<1x8x256xf32>,
    %c7_i32 = arith.constant 7 : i32
    %184 = arith.index_cast %c7_i32 : i32 to index
    %c0_64 = arith.constant 0 : index
    %c0_65 = arith.constant 0 : index
    %185 = vector.load %arg2[%184, %c0_64, %c0_65] : memref<8x8x256xf32, #tpu.memory_space<vmem>>, vector<1x8x256xf32>
    %186 = vector.shape_cast %185 : vector<1x8x256xf32> to vector<8x256xf32>
    %187 = arith.truncf %165 : vector<8x128xf32> to vector<8x128xbf16>
    %cst_66 = arith.constant dense<0.000000e+00> : vector<8x256xf32>
    %188 = tpu.matmul %187, %3, %cst_66 {dimension_numbers = #tpu.dot_dimension_numbers<[1], [0], [0], [1], [0, 0, 1, 1], [], []>} : vector<8x128xbf16>, vector<128x256xbf16>, vector<8x256xf32> -> vector<8x256xf32>
    %189 = arith.addf %186, %188 : vector<8x256xf32>
    %190 = vector.extract_strided_slice %189 {offsets = [0, 0], sizes = [8, 128], strides = [1, 1]} : vector<8x256xf32> to vector<8x128xf32>
    %191 = arith.truncf %189 : vector<8x256xf32> to vector<8x256xbf16>
    %cst_67 = arith.constant dense<0.000000e+00> : vector<8x128xf32>
    %192 = tpu.matmul %191, %4, %cst_67 {dimension_numbers = #tpu.dot_dimension_numbers<[1], [0], [0], [1], [0, 0, 1, 1], [], []>} : vector<8x256xbf16>, vector<256x128xbf16>, vector<8x128xf32> -> vector<8x128xf32>
    %193 = arith.addf %192, %7 : vector<8x128xf32>
    %cst_68 = arith.constant dense<0xFF800000> : vector<8xf32>
    %194 = vector.multi_reduction <maximumf>, %193, %cst_68 [1] : vector<8x128xf32> to vector<8xf32>
    %195 = vector.shape_cast %194 : vector<8xf32> to vector<8x1xf32>
    %196 = vector.broadcast %195 : vector<8x1xf32> to vector<8x128xf32>
    %197 = arith.subf %193, %196 : vector<8x128xf32>
    %198 = math.exp %197 : vector<8x128xf32>
    %cst_69 = arith.constant dense<0.000000e+00> : vector<8xf32>
    %199 = vector.multi_reduction <add>, %198, %cst_69 [1] : vector<8x128xf32> to vector<8xf32>
    %200 = vector.shape_cast %199 : vector<8xf32> to vector<8x1xf32>
    %201 = math.log %200 : vector<8x1xf32>
    %202 = vector.broadcast %201 : vector<8x1xf32> to vector<8x128xf32>
    %203 = arith.subf %197, %202 : vector<8x128xf32>
    %204 = tpu.concatenate %190, %203 in 1 : vector<8x128xf32>, vector<8x128xf32> -> vector<8x256xf32>
    %205 = arith.index_cast %c7_i32 : i32 to index
    %c0_70 = arith.constant 0 : index
    %c0_71 = arith.constant 0 : index
    %206 = vector.load %arg6[%205, %c0_70, %c0_71] : memref<8x8x256xf32, #tpu.memory_space<vmem>>, vector<1x8x256xf32>
    %207 = vector.shape_cast %206 : vector<1x8x256xf32> to vector<8x256xf32>
    %208 = vector.shape_cast %204 : vector<8x256xf32> to vector<1x8x256xf32>
    tpu.vector_store %arg6[%205, %c0_70, %c0_71], %208 {strides = array<i32>} : memref<8x8x256xf32, #tpu.memory_space<vmem>>, vector<1x8x256xf32>,
    %c8_i32 = arith.constant 8 : i32
    %c0_72 = arith.constant 0 : index
    %c0_73 = arith.constant 0 : index
    %209 = vector.load %arg7[%c0_72, %c0_73] : memref<8x128xf32, #tpu.memory_space<vmem>>, vector<8x128xf32>
    tpu.vector_store %arg7[%c0_72, %c0_73], %190 {strides = array<i32>} : memref<8x128xf32, #tpu.memory_space<vmem>>, vector<8x128xf32>,
    return
  }
  func.func @transform_0(%arg0: i32) -> (i32, i32) {
    %c0_i32 = arith.constant 0 : i32
    %c0_i32_0 = arith.constant 0 : i32
    %c0_i32_1 = arith.constant 0 : i32
    return %c0_i32, %c0_i32_0 : i32, i32
  }
  func.func @transform_1(%arg0: i32) -> (i32, i32, i32) {
    %c0_i32 = arith.constant 0 : i32
    %c0_i32_0 = arith.constant 0 : i32
    %c0_i32_1 = arith.constant 0 : i32
    return %arg0, %c0_i32, %c0_i32_0 : i32, i32, i32
  }
  func.func @transform_2(%arg0: i32) -> (i32, i32) {
    %c0_i32 = arith.constant 0 : i32
    %c0_i32_0 = arith.constant 0 : i32
    %c0_i32_1 = arith.constant 0 : i32
    return %c0_i32, %c0_i32_0 : i32, i32
  }
  func.func @transform_3(%arg0: i32) -> (i32, i32) {
    %c0_i32 = arith.constant 0 : i32
    %c0_i32_0 = arith.constant 0 : i32
    %c0_i32_1 = arith.constant 0 : i32
    return %c0_i32, %c0_i32_0 : i32, i32
  }
  func.func @transform_4(%arg0: i32) -> (i32, i32) {
    %c0_i32 = arith.constant 0 : i32
    %c0_i32_0 = arith.constant 0 : i32
    %c0_i32_1 = arith.constant 0 : i32
    return %c0_i32, %c0_i32_0 : i32, i32
  }
  func.func @transform_5(%arg0: i32) -> (i32, i32, i32) {
    %c0_i32 = arith.constant 0 : i32
    %c0_i32_0 = arith.constant 0 : i32
    %c0_i32_1 = arith.constant 0 : i32
    return %arg0, %c0_i32, %c0_i32_0 : i32, i32, i32
  }
}

</mosaic_0001>

<bundles_post_ra>
// kernel: rnn_sequence_forward.1
= control target key start
LH: loop header
LB: loop body
LE: loop exit
PB: predicated region body
PF: predicated region fallthrough
CT: control target
= control target key end

     0   :  { %v1381_v1 = vmov 0   ;;  %s1972_s2 = inlined_call_operand.vmem [shape: bf16[128,256], index: 2, kind: input, shape index: {}]   ;;  %s1973_s3 = inlined_call_operand.vmem [shape: bf16[256,128], index: 3, kind: input, shape index: {}]   ;;  %s1974_s0 = inlined_call_operand.vmem [shape: f32[8,128], index: 0, kind: input, shape index: {}]   ;;  %s1975_s1 = inlined_call_operand.vmem [shape: f32[8,8,256], index: 1, kind: input, shape index: {}]   ;;  %s1976_s5 = inlined_call_operand.vmem [shape: f32[8,8,256], index: 5, kind: output, shape index: {}]   ;;  %s1977_s4 = inlined_call_operand.vmem [shape: f32[1,128], index: 4, kind: input, shape index: {}]  }
   0x1   :  { %v1415_v0 = vld [vmem:[%s1972_s2 + $0x4] ss:$8 sps:$4 sm:$0xff]   ;;  %198 = vmatprep.mubr.bf16.mxu0 %v1381_v1  ;;  %v1421_v2 = vld [vmem:[%s1972_s2] ss:$8 sps:$4 sm:$0xff]   ;;  %v1427_v3 = vld [vmem:[%s1972_s2 + $0x14] ss:$8 sps:$4 sm:$0xff]  }
   0x2   :  { %166 = vmatprep.subr.bf16.mxu0 %v1415_v0  ;;  %v1433_v4 = vld [vmem:[%s1972_s2 + $0x10] ss:$8 sps:$4 sm:$0xff]   ;;  %v1439_v5 = vld [vmem:[%s1972_s2 + $0x24] ss:$8 sps:$4 sm:$0xff]   ;;  %v1445_v6 = vld [vmem:[%s1972_s2 + $0x20] ss:$8 sps:$4 sm:$0xff]  }
   0x3   :  { %167 = vmatpush1.bf16.msra.mxu0 %v1421_v2  ;;  %v1451_v7 = vld [vmem:[%s1972_s2 + $0x34] ss:$8 sps:$4 sm:$0xff]   ;;  %v1456_v8 = vld [vmem:[%s1972_s2 + $0x30] ss:$8 sps:$4 sm:$0xff]   ;;  %v1461_v9 = vld [vmem:[%s1972_s2 + $0x44] ss:$8 sps:$4 sm:$0xff]  }
   0x4   :  { %168 = vmatprep.subr.bf16.mxu0 %v1427_v3  ;;  %v1467_v10 = vld [vmem:[%s1973_s3 + $0x40] sm:$0xff]   ;;  %v1484_v13 = vld [vmem:[%s1973_s3 + $0x48] sm:$0xff]   ;;  %v1497_v15 = vld [vmem:[%s1973_s3 + $0x50] sm:$0xff]  }
   0x5   :  { %v1473_v11 = vld [vmem:[%s1973_s3] sm:$0xff]   ;;  %1132 = vmatprep.subr.bf16.mxu1 %v1467_v10  ;;  %v1490_v14 = vld [vmem:[%s1973_s3 + $0x8] sm:$0xff]   ;;  %v1503_v16 = vld [vmem:[%s1972_s2 + $0x54] ss:$8 sps:$4 sm:$0xff]  }
   0x6   :  { %v1478_v12 = vld [vmem:[%s1972_s2 + $0x40] ss:$8 sps:$4 sm:$0xff]   ;;  %1133 = vmatpush3.bf16.msra.mxu1 %v1473_v11  ;;  %v1508_v17 = vld [vmem:[%s1972_s2 + $0x50] ss:$8 sps:$4 sm:$0xff]   ;;  %v1527_v20 = vld [vmem:[%s1972_s2 + $0x64] ss:$8 sps:$4 sm:$0xff]  }
   0x7   :  { %169 = vmatpush1.bf16.msra.mxu0 %v1433_v4  ;;  %1134 = vmatprep.subr.bf16.mxu1 %v1484_v13  ;;  %v1514_v18 = vld [vmem:[%s1973_s3 + $0x10] sm:$0xff]   ;;  %v1521_v19 = vld [vmem:[%s1973_s3 + $0x58] sm:$0xff]   ;;  %v1532_v21 = vld [vmem:[%s1972_s2 + $0x60] ss:$8 sps:$4 sm:$0xff]  }
   0x8   :  { %170 = vmatprep.subr.bf16.mxu0 %v1439_v5  ;;  %v1538_v22 = vld [vmem:[%s1973_s3 + $0x18] sm:$0xff]   ;;  %v1545_v23 = vld [vmem:[%s1973_s3 + $0x60] sm:$0xff]   ;;  %v1572_v28 = vld [vmem:[%s1973_s3 + $0x68] sm:$0xff]  }
   0x9   :  { %v1551_v24 = vld [vmem:[%s1972_s2 + $0x74] ss:$8 sps:$4 sm:$0xff]   ;;  %v1557_v25 = vld [vmem:[%s1973_s3 + $0x20] sm:$0xff]   ;;  %v1563_v26 = vld [vmem:[%s1972_s2 + $0x70] ss:$8 sps:$4 sm:$0xff]  }
   0xa   :  { %1135 = vmatpush3.bf16.msra.mxu1 %v1490_v14  ;;  %v25_v27 = vld [vmem:[%s1974_s0] sm:$0xff]  ;;  %v1579_v30 = vld [vmem:[%s1973_s3 + $0x28] sm:$0xff]   ;;  %v1586_v31 = vld [vmem:[%s1973_s3 + $0x70] sm:$0xff]  }
   0xb   :  { %171 = vmatpush1.bf16.msra.mxu0 %v1445_v6  ;;  %1136 = vmatprep.subr.bf16.mxu1 %v1497_v15  ;;  %v85_v29 = vpack.c.bf16 %v25_v27, %v25_v27  ;;  %v1611_v32 = vld [vmem:[%s1973_s3 + $0x30] sm:$0xff]   ;;  %v1617_v33 = vld [vmem:[%s1973_s3 + $0x78] sm:$0xff]   ;;  %v83_v35 = vld [vmem:[%s1975_s1] sm:$0xff] }
   0xc   :  { %172 = vmatprep.subr.bf16.mxu0 %v1451_v7  ;;  %v1622_v34 = vld [vmem:[%s1973_s3 + $0x38] sm:$0xff]   ;;  %v84_v36 = vld [vmem:[%s1975_s1 + $0x8] sm:$0xff]  ;;  %v1104_v45 = vld [vmem:[%s1975_s1 + $0x10] sm:$0xff] }
   0xd   :  { %v1105_v46 = vld [vmem:[%s1975_s1 + $0x18] sm:$0xff]  ;;  %v1681_v56 = vld [vmem:[%s1977_s4] ss:$0 sm:$0xff]  ;;  %v1109_v63 = vld [vmem:[%s1975_s1 + $0x28] sm:$0xff] }
   0xe   :  { %1137 = vmatpush3.bf16.msra.mxu1 %v1514_v18  ;;  %v1108_v62 = vld [vmem:[%s1975_s1 + $0x20] sm:$0xff] }
   0xf   :  { %173 = vmatpush1.bf16.msra.mxu0 %v1456_v8  ;;  %1138 = vmatprep.subr.bf16.mxu1 %v1521_v19 }
  0x10   :  { %174 = vmatprep.subr.bf16.mxu0 %v1461_v9 }
  0x12   :  { %1139 = vmatpush3.bf16.msra.mxu1 %v1538_v22 }
  0x13   :  { %175 = vmatpush1.bf16.msra.mxu0 %v1478_v12  ;;  %1140 = vmatprep.subr.bf16.mxu1 %v1545_v23 }
  0x14   :  { %176 = vmatprep.subr.bf16.mxu0 %v1503_v16 }
  0x16   :  { %1141 = vmatpush3.bf16.msra.mxu1 %v1557_v25 }
  0x17   :  { %177 = vmatpush1.bf16.msra.mxu0 %v1508_v17  ;;  %1142 = vmatprep.subr.bf16.mxu1 %v1572_v28 }
  0x18   :  { %178 = vmatprep.subr.bf16.mxu0 %v1527_v20 }
  0x1a   :  { %1143 = vmatpush3.bf16.msra.mxu1 %v1579_v30 }
  0x1b   :  { %179 = vmatpush1.bf16.msra.mxu0 %v1532_v21  ;;  %1144 = vmatprep.subr.bf16.mxu1 %v1586_v31 }
  0x1c   :  { %180 = vmatprep.subr.bf16.mxu0 %v1551_v24 }
  0x1e   :  { %1145 = vmatpush3.bf16.msra.mxu1 %v1611_v32 }
  0x1f   :  { %181 = vmatpush1.bf16.msra.mxu0 %v1563_v26  ;;  %1146 = vmatprep.subr.bf16.mxu1 %v1617_v33 }
  0x20   :  { %362 = vmatprep.subr.bf16.mxu0 %v1415_v0 }
  0x22   :  { %199 = vmatmul.mubr.bf16.vlgmr.msra.gmra.mrb[0].mxu0 %v85_v29  ;;  %1147 = vmatpush3.bf16.msra.mxu1 %v1622_v34 }
  0x23   :  { %363 = vmatpush1.bf16.msra.mxu0 %v1421_v2  ;;  %394 = vmatprep.mubr.bf16.mxu0 %v1381_v1 }
  0x24   :  { %364 = vmatprep.subr.bf16.mxu0 %v1427_v3  ;;  %1154 = vmatprep.subr.bf16.mxu1 %v1467_v10 }
  0x27   :  { %365 = vmatpush1.bf16.msra.mxu0 %v1433_v4 }
  0x28   :  { %366 = vmatprep.subr.bf16.mxu0 %v1439_v5 }
  0x2b   :  { %367 = vmatpush1.bf16.msra.mxu0 %v1445_v6 }
  0x2c   :  { %368 = vmatprep.subr.bf16.mxu0 %v1451_v7 }
  0x2f   :  { %369 = vmatpush1.bf16.msra.mxu0 %v1456_v8 }
  0x30   :  { %370 = vmatprep.subr.bf16.mxu0 %v1461_v9 }
  0x33   :  { %371 = vmatpush1.bf16.msra.mxu0 %v1478_v12 }
  0x34   :  { %372 = vmatprep.subr.bf16.mxu0 %v1503_v16 }
  0x37   :  { %373 = vmatpush1.bf16.msra.mxu0 %v1508_v17 }
  0x38   :  { %374 = vmatprep.subr.bf16.mxu0 %v1527_v20 }
  0x3b   :  { %375 = vmatpush1.bf16.msra.mxu0 %v1532_v21 }
  0x3c   :  { %376 = vmatprep.subr.bf16.mxu0 %v1551_v24 }
  0x3f   :  { %377 = vmatpush1.bf16.msra.mxu0 %v1563_v26 }
  0x40   :  { %463 = vmatprep.subr.bf16.mxu0 %v1415_v0 }
  0xf5   :  { %v200_v37 = vpop.f32.mrb[0].mxu0 }
  0xf6   :  { %v207_v38 = vadd.f32 %v200_v37, %v83_v35  ;;  %v202_v39 = vpop.f32.mrb[1].mxu0 }
  0xf7   :  { %v204_v40 = vpop.f32.mrb[2].mxu0  ;;  %v208_v41 = vadd.f32 %v202_v39, %v84_v36 }
  0xf8   :  { %v209_v42 = vpack.c.bf16 %v207_v38, %v207_v38  ;;  %357 = vst [vmem:[%s1976_s5] sm:$0xff] %v207_v38  ;;  %v205_v43 = vpop.f32.mrb[3].mxu0 }
  0xf9   :  { %v210_v44 = vpack.c.bf16 %v208_v41, %v208_v41 }
  0xfa   :  { %395 = vmatmul.mubr.bf16.vlgmr.msra.gmra.mrb[4].mxu0 %v209_v42 }
  0xfb   :  { %339 = vmatprep.mubr.bf16.mxu1 %v210_v44  ;;  %464 = vmatpush1.bf16.msra.mxu0 %v1421_v2 }
  0xfc   :  { %340 = vmatmul.mubr.bf16.vlgmr.msra.gmra.mrb[0].mxu1 %v209_v42  ;;  %465 = vmatprep.subr.bf16.mxu0 %v1427_v3 }
  0xfd   :  { %1155 = vmatpush3.bf16.msra.mxu1 %v1473_v11  ;;  %495 = vmatprep.mubr.bf16.mxu0 %v1381_v1 }
  0xfe   :  { %1156 = vmatprep.subr.bf16.mxu1 %v1484_v13 }
  0xff   :  { %466 = vmatpush1.bf16.msra.mxu0 %v1433_v4 }
 0x100   :  { %467 = vmatprep.subr.bf16.mxu0 %v1439_v5 }
 0x101   :  { %1157 = vmatpush3.bf16.msra.mxu1 %v1490_v14 }
 0x102   :  { %1158 = vmatprep.subr.bf16.mxu1 %v1497_v15 }
 0x103   :  { %468 = vmatpush1.bf16.msra.mxu0 %v1445_v6 }
 0x104   :  { %469 = vmatprep.subr.bf16.mxu0 %v1451_v7 }
 0x105   :  { %1159 = vmatpush3.bf16.msra.mxu1 %v1514_v18 }
 0x106   :  { %1160 = vmatprep.subr.bf16.mxu1 %v1521_v19 }
 0x107   :  { %470 = vmatpush1.bf16.msra.mxu0 %v1456_v8 }
 0x108   :  { %471 = vmatprep.subr.bf16.mxu0 %v1461_v9 }
 0x109   :  { %1161 = vmatpush3.bf16.msra.mxu1 %v1538_v22 }
 0x10a   :  { %1162 = vmatprep.subr.bf16.mxu1 %v1545_v23 }
 0x10b   :  { %472 = vmatpush1.bf16.msra.mxu0 %v1478_v12 }
 0x10c   :  { %473 = vmatprep.subr.bf16.mxu0 %v1503_v16 }
 0x10d   :  { %1163 = vmatpush3.bf16.msra.mxu1 %v1557_v25 }
 0x10e   :  { %1164 = vmatprep.subr.bf16.mxu1 %v1572_v28 }
 0x10f   :  { %474 = vmatpush1.bf16.msra.mxu0 %v1508_v17 }
 0x110   :  { %475 = vmatprep.subr.bf16.mxu0 %v1527_v20 }
 0x111   :  { %1165 = vmatpush3.bf16.msra.mxu1 %v1579_v30 }
 0x112   :  { %1166 = vmatprep.subr.bf16.mxu1 %v1586_v31 }
 0x113   :  { %476 = vmatpush1.bf16.msra.mxu0 %v1532_v21 }
 0x114   :  { %477 = vmatprep.subr.bf16.mxu0 %v1551_v24 }
 0x115   :  { %1167 = vmatpush3.bf16.msra.mxu1 %v1611_v32 }
 0x116   :  { %1168 = vmatprep.subr.bf16.mxu1 %v1617_v33 }
 0x117   :  { %478 = vmatpush1.bf16.msra.mxu0 %v1563_v26 }
 0x118   :  { %564 = vmatprep.subr.bf16.mxu0 %v1415_v0 }
 0x119   :  { %1169 = vmatpush3.bf16.msra.mxu1 %v1622_v34 }
 0x11a   :  { %1176 = vmatprep.subr.bf16.mxu1 %v1467_v10 }
 0x1cd   :  { %v396_v47 = vpop.f32.mrb[4].mxu0 }
 0x1ce   :  { %v403_v48 = vadd.f32 %v1104_v45, %v396_v47  ;;  %v398_v49 = vpop.f32.mrb[5].mxu0  ;;  %v1112_v47 = vld [vmem:[%s1975_s1 + $0x30] sm:$0xff] }
 0x1cf   :  { %v404_v50 = vadd.f32 %v1105_v46, %v398_v49  ;;  %v1148_v51 = vpop.f32.mrb[0].mxu1  ;;  %v400_v52 = vpop.f32.mrb[6].mxu0 }
 0x1d0   :  { %v405_v53 = vpack.c.bf16 %v403_v48, %v403_v48  ;;  %1106 = vst [vmem:[%s1976_s5 + $0x10] sm:$0xff] %v403_v48  ;;  %v1149_v54 = vpop.f32.mrb[1].mxu1  ;;  %v401_v55 = vpop.f32.mrb[7].mxu0  ;;  %v1113_v48 = vld [vmem:[%s1975_s1 + $0x38] sm:$0xff] }
 0x1d1   :  { %v406_v57 = vpack.c.bf16 %v404_v50, %v404_v50  ;;  %v1150_v58 = vadd.f32 %v1149_v54, %v1148_v51  ;;  %v1151_v59 = vpop.f32.mrb[2].mxu1 }
 0x1d2   :  { %v1152_v60 = vpop.f32.mrb[3].mxu1  ;;  %496 = vmatmul.mubr.bf16.vlgmr.msra.gmra.mrb[8].mxu0 %v405_v53 }
 0x1d3   :  { %439 = vmatprep.mubr.bf16.mxu1 %v406_v57  ;;  %v1684_v61 = vadd.f32 %v1150_v58, %v1681_v56  ;;  %565 = vmatpush1.bf16.msra.mxu0 %v1421_v2 }
 0x1d4   :  { %440 = vmatmul.mubr.bf16.vlgmr.msra.gmra.mrb[4].mxu1 %v405_v53  ;;  %566 = vmatprep.subr.bf16.mxu0 %v1427_v3 }
 0x1d5   :  { %347 = vmax.xlane.f32.xlu0 %v1684_v61  ;;  %1177 = vmatpush3.bf16.msra.mxu1 %v1473_v11 }
 0x1d6   :  { %1178 = vmatprep.subr.bf16.mxu1 %v1484_v13  ;;  %596 = vmatprep.mubr.bf16.mxu0 %v1381_v1 }
 0x1d7   :  { %567 = vmatpush1.bf16.msra.mxu0 %v1433_v4 }
 0x1d8   :  { %568 = vmatprep.subr.bf16.mxu0 %v1439_v5 }
 0x1d9   :  { %1179 = vmatpush3.bf16.msra.mxu1 %v1490_v14 }
 0x1da   :  { %1180 = vmatprep.subr.bf16.mxu1 %v1497_v15 }
 0x1db   :  { %569 = vmatpush1.bf16.msra.mxu0 %v1445_v6 }
 0x1dc   :  { %570 = vmatprep.subr.bf16.mxu0 %v1451_v7 }
 0x1dd   :  { %1181 = vmatpush3.bf16.msra.mxu1 %v1514_v18 }
 0x1de   :  { %1182 = vmatprep.subr.bf16.mxu1 %v1521_v19 }
 0x1df   :  { %571 = vmatpush1.bf16.msra.mxu0 %v1456_v8 }
 0x1e0   :  { %572 = vmatprep.subr.bf16.mxu0 %v1461_v9 }
 0x1e1   :  { %1183 = vmatpush3.bf16.msra.mxu1 %v1538_v22 }
 0x1e2   :  { %1184 = vmatprep.subr.bf16.mxu1 %v1545_v23 }
 0x1e3   :  { %573 = vmatpush1.bf16.msra.mxu0 %v1478_v12 }
 0x1e4   :  { %574 = vmatprep.subr.bf16.mxu0 %v1503_v16 }
 0x1e5   :  { %1185 = vmatpush3.bf16.msra.mxu1 %v1557_v25 }
 0x1e6   :  { %1186 = vmatprep.subr.bf16.mxu1 %v1572_v28 }
 0x1e7   :  { %575 = vmatpush1.bf16.msra.mxu0 %v1508_v17 }
 0x1e8   :  { %576 = vmatprep.subr.bf16.mxu0 %v1527_v20 }
 0x1e9   :  { %1187 = vmatpush3.bf16.msra.mxu1 %v1579_v30 }
 0x1ea   :  { %1188 = vmatprep.subr.bf16.mxu1 %v1586_v31 }
 0x1eb   :  { %577 = vmatpush1.bf16.msra.mxu0 %v1532_v21 }
 0x1ec   :  { %578 = vmatprep.subr.bf16.mxu0 %v1551_v24 }
 0x1ed   :  { %1189 = vmatpush3.bf16.msra.mxu1 %v1611_v32 }
 0x1ee   :  { %1190 = vmatprep.subr.bf16.mxu1 %v1617_v33 }
 0x1ef   :  { %579 = vmatpush1.bf16.msra.mxu0 %v1563_v26 }
 0x1f0   :  { %665 = vmatprep.subr.bf16.mxu0 %v1415_v0 }
 0x1f1   :  { %1191 = vmatpush3.bf16.msra.mxu1 %v1622_v34 }
 0x1f2   :  { %1198 = vmatprep.subr.bf16.mxu1 %v1467_v10 }
 0x2a5   :  { %v497_v27 = vpop.f32.mrb[8].mxu0 }
 0x2a6   :  { %v504_v29 = vadd.f32 %v1108_v62, %v497_v27  ;;  %v499_v35 = vpop.f32.mrb[9].mxu0 }
 0x2a7   :  { %v505_v36 = vadd.f32 %v1109_v63, %v499_v35  ;;  %v1170_v37 = vpop.f32.mrb[4].mxu1  ;;  %v501_v38 = vpop.f32.mrb[10].mxu0  ;;  %v1117_v35 = vld [vmem:[%s1975_s1 + $0x48] sm:$0xff] }
 0x2a8   :  { %v506_v39 = vpack.c.bf16 %v504_v29, %v504_v29  ;;  %1110 = vst [vmem:[%s1976_s5 + $0x20] sm:$0xff] %v504_v29  ;;  %v1171_v40 = vpop.f32.mrb[5].mxu1  ;;  %v502_v41 = vpop.f32.mrb[11].mxu0  ;;  %v1116_v29 = vld [vmem:[%s1975_s1 + $0x40] sm:$0xff] }
 0x2a9   :  { %v507_v42 = vpack.c.bf16 %v505_v36, %v505_v36  ;;  %v1172_v43 = vadd.f32 %v1171_v40, %v1170_v37  ;;  %v1173_v44 = vpop.f32.mrb[6].mxu1 }
 0x2aa   :  { %v1174_v45 = vpop.f32.mrb[7].mxu1  ;;  %597 = vmatmul.mubr.bf16.vlgmr.msra.gmra.mrb[12].mxu0 %v506_v39 }
 0x2ab   :  { %540 = vmatprep.mubr.bf16.mxu1 %v507_v42  ;;  %v1730_v46 = vadd.f32 %v1172_v43, %v1681_v56  ;;  %666 = vmatpush1.bf16.msra.mxu0 %v1421_v2 }
 0x2ac   :  { %541 = vmatmul.mubr.bf16.vlgmr.msra.gmra.mrb[8].mxu1 %v506_v39  ;;  %667 = vmatprep.subr.bf16.mxu0 %v1427_v3 }
 0x2ad   :  { %447 = vmax.xlane.f32.xlu0 %v1730_v46  ;;  %1199 = vmatpush3.bf16.msra.mxu1 %v1473_v11 }
 0x2ae   :  { %1200 = vmatprep.subr.bf16.mxu1 %v1484_v13  ;;  %697 = vmatprep.mubr.bf16.mxu0 %v1381_v1 }
 0x2af   :  { %668 = vmatpush1.bf16.msra.mxu0 %v1433_v4 }
 0x2b0   :  { %669 = vmatprep.subr.bf16.mxu0 %v1439_v5 }
 0x2b1   :  { %1201 = vmatpush3.bf16.msra.mxu1 %v1490_v14 }
 0x2b2   :  { %1202 = vmatprep.subr.bf16.mxu1 %v1497_v15 }
 0x2b3   :  { %670 = vmatpush1.bf16.msra.mxu0 %v1445_v6 }
 0x2b4   :  { %671 = vmatprep.subr.bf16.mxu0 %v1451_v7 }
 0x2b5   :  { %1203 = vmatpush3.bf16.msra.mxu1 %v1514_v18 }
 0x2b6   :  { %1204 = vmatprep.subr.bf16.mxu1 %v1521_v19 }
 0x2b7   :  { %672 = vmatpush1.bf16.msra.mxu0 %v1456_v8 }
 0x2b8   :  { %673 = vmatprep.subr.bf16.mxu0 %v1461_v9 }
 0x2b9   :  { %1205 = vmatpush3.bf16.msra.mxu1 %v1538_v22 }
 0x2ba   :  { %1206 = vmatprep.subr.bf16.mxu1 %v1545_v23 }
 0x2bb   :  { %674 = vmatpush1.bf16.msra.mxu0 %v1478_v12 }
 0x2bc   :  { %675 = vmatprep.subr.bf16.mxu0 %v1503_v16 }
 0x2bd   :  { %1207 = vmatpush3.bf16.msra.mxu1 %v1557_v25 }
 0x2be   :  { %1208 = vmatprep.subr.bf16.mxu1 %v1572_v28 }
 0x2bf   :  { %676 = vmatpush1.bf16.msra.mxu0 %v1508_v17 }
 0x2c0   :  { %677 = vmatprep.subr.bf16.mxu0 %v1527_v20 }
 0x2c1   :  { %1209 = vmatpush3.bf16.msra.mxu1 %v1579_v30 }
 0x2c2   :  { %1210 = vmatprep.subr.bf16.mxu1 %v1586_v31 }
 0x2c3   :  { %678 = vmatpush1.bf16.msra.mxu0 %v1532_v21 }
 0x2c4   :  { %679 = vmatprep.subr.bf16.mxu0 %v1551_v24 }
 0x2c5   :  { %1211 = vmatpush3.bf16.msra.mxu1 %v1611_v32 }
 0x2c6   :  { %1212 = vmatprep.subr.bf16.mxu1 %v1617_v33 }
 0x2c7   :  { %680 = vmatpush1.bf16.msra.mxu0 %v1563_v26 }
 0x2c8   :  { %766 = vmatprep.subr.bf16.mxu0 %v1415_v0 }
 0x2c9   :  { %1213 = vmatpush3.bf16.msra.mxu1 %v1622_v34 }
 0x2ca   :  { %1220 = vmatprep.subr.bf16.mxu1 %v1467_v10 }
 0x37d   :  { %v598_v49 = vpop.f32.mrb[12].mxu0 }
 0x37e   :  { %v605_v50 = vadd.f32 %v1112_v47, %v598_v49  ;;  %v600_v51 = vpop.f32.mrb[13].mxu0 }
 0x37f   :  { %v606_v52 = vadd.f32 %v1113_v48, %v600_v51  ;;  %v1192_v53 = vpop.f32.mrb[8].mxu1  ;;  %v602_v54 = vpop.f32.mrb[14].mxu0  ;;  %v1120_v51 = vld [vmem:[%s1975_s1 + $0x50] sm:$0xff] }
 0x380   :  { %v607_v55 = vpack.c.bf16 %v605_v50, %v605_v50  ;;  %1114 = vst [vmem:[%s1976_s5 + $0x30] sm:$0xff] %v605_v50  ;;  %v1193_v57 = vpop.f32.mrb[9].mxu1  ;;  %v603_v58 = vpop.f32.mrb[15].mxu0 }
 0x381   :  { %v608_v59 = vpack.c.bf16 %v606_v52, %v606_v52  ;;  %v1194_v60 = vadd.f32 %v1193_v57, %v1192_v53  ;;  %v1195_v62 = vpop.f32.mrb[10].mxu1  ;;  %v1121_v52 = vld [vmem:[%s1975_s1 + $0x58] sm:$0xff] }
 0x382   :  { %v1196_v63 = vpop.f32.mrb[11].mxu1  ;;  %698 = vmatmul.mubr.bf16.vlgmr.msra.gmra.mrb[16].mxu0 %v607_v55 }
 0x383   :  { %641 = vmatprep.mubr.bf16.mxu1 %v608_v59  ;;  %v1776_v27 = vadd.f32 %v1194_v60, %v1681_v56  ;;  %767 = vmatpush1.bf16.msra.mxu0 %v1421_v2 }
 0x384   :  { %642 = vmatmul.mubr.bf16.vlgmr.msra.gmra.mrb[12].mxu1 %v607_v55  ;;  %768 = vmatprep.subr.bf16.mxu0 %v1427_v3 }
 0x385   :  { %548 = vmax.xlane.f32.xlu1 %v1776_v27  ;;  %1221 = vmatpush3.bf16.msra.mxu1 %v1473_v11 }
 0x386   :  { %1222 = vmatprep.subr.bf16.mxu1 %v1484_v13  ;;  %798 = vmatprep.mubr.bf16.mxu0 %v1381_v1 }
 0x387   :  { %769 = vmatpush1.bf16.msra.mxu0 %v1433_v4 }
 0x388   :  { %770 = vmatprep.subr.bf16.mxu0 %v1439_v5 }
 0x389   :  { %1223 = vmatpush3.bf16.msra.mxu1 %v1490_v14 }
 0x38a   :  { %1224 = vmatprep.subr.bf16.mxu1 %v1497_v15 }
 0x38b   :  { %771 = vmatpush1.bf16.msra.mxu0 %v1445_v6 }
 0x38c   :  { %772 = vmatprep.subr.bf16.mxu0 %v1451_v7 }
 0x38d   :  { %1225 = vmatpush3.bf16.msra.mxu1 %v1514_v18 }
 0x38e   :  { %1226 = vmatprep.subr.bf16.mxu1 %v1521_v19 }
 0x38f   :  { %773 = vmatpush1.bf16.msra.mxu0 %v1456_v8 }
 0x390   :  { %774 = vmatprep.subr.bf16.mxu0 %v1461_v9 }
 0x391   :  { %1227 = vmatpush3.bf16.msra.mxu1 %v1538_v22 }
 0x392   :  { %1228 = vmatprep.subr.bf16.mxu1 %v1545_v23 }
 0x393   :  { %775 = vmatpush1.bf16.msra.mxu0 %v1478_v12 }
 0x394   :  { %776 = vmatprep.subr.bf16.mxu0 %v1503_v16 }
 0x395   :  { %1229 = vmatpush3.bf16.msra.mxu1 %v1557_v25 }
 0x396   :  { %1230 = vmatprep.subr.bf16.mxu1 %v1572_v28 }
 0x397   :  { %777 = vmatpush1.bf16.msra.mxu0 %v1508_v17 }
 0x398   :  { %778 = vmatprep.subr.bf16.mxu0 %v1527_v20 }
 0x399   :  { %1231 = vmatpush3.bf16.msra.mxu1 %v1579_v30 }
 0x39a   :  { %1232 = vmatprep.subr.bf16.mxu1 %v1586_v31 }
 0x39b   :  { %779 = vmatpush1.bf16.msra.mxu0 %v1532_v21 }
 0x39c   :  { %780 = vmatprep.subr.bf16.mxu0 %v1551_v24 }
 0x39d   :  { %1233 = vmatpush3.bf16.msra.mxu1 %v1611_v32 }
 0x39e   :  { %1234 = vmatprep.subr.bf16.mxu1 %v1617_v33 }
 0x39f   :  { %781 = vmatpush1.bf16.msra.mxu0 %v1563_v26 }
 0x3a0   :  { %867 = vmatprep.subr.bf16.mxu0 %v1415_v0 }
 0x3a1   :  { %1235 = vmatpush3.bf16.msra.mxu1 %v1622_v34 }
 0x3a2   :  { %1242 = vmatprep.subr.bf16.mxu1 %v1467_v10 }
 0x455   :  { %v699_v36 = vpop.f32.mrb[16].mxu0 }
 0x456   :  { %v706_v37 = vadd.f32 %v1116_v29, %v699_v36  ;;  %v701_v38 = vpop.f32.mrb[17].mxu0 }
 0x457   :  { %v707_v39 = vadd.f32 %v1117_v35, %v701_v38  ;;  %v1214_v40 = vpop.f32.mrb[12].mxu1  ;;  %v703_v41 = vpop.f32.mrb[18].mxu0 }
 0x458   :  { %v708_v42 = vpack.c.bf16 %v706_v37, %v706_v37  ;;  %1118 = vst [vmem:[%s1976_s5 + $0x40] sm:$0xff] %v706_v37  ;;  %v1215_v43 = vpop.f32.mrb[13].mxu1  ;;  %v704_v44 = vpop.f32.mrb[19].mxu0 }
 0x459   :  { %v709_v45 = vpack.c.bf16 %v707_v39, %v707_v39  ;;  %v1216_v47 = vadd.f32 %v1215_v43, %v1214_v40  ;;  %v1217_v48 = vpop.f32.mrb[14].mxu1 }
 0x45a   :  { %v1218_v49 = vpop.f32.mrb[15].mxu1  ;;  %799 = vmatmul.mubr.bf16.vlgmr.msra.gmra.mrb[20].mxu0 %v708_v42 }
 0x45b   :  { %742 = vmatprep.mubr.bf16.mxu1 %v709_v45  ;;  %v1822_v50 = vadd.f32 %v1216_v47, %v1681_v56  ;;  %868 = vmatpush1.bf16.msra.mxu0 %v1421_v2 }
 0x45c   :  { %743 = vmatmul.mubr.bf16.vlgmr.msra.gmra.mrb[16].mxu1 %v708_v42  ;;  %869 = vmatprep.subr.bf16.mxu0 %v1427_v3 }
 0x45d   :  { %649 = vmax.xlane.f32.xlu1 %v1822_v50  ;;  %1243 = vmatpush3.bf16.msra.mxu1 %v1473_v11 }
 0x45e   :  { %1244 = vmatprep.subr.bf16.mxu1 %v1484_v13  ;;  %899 = vmatprep.mubr.bf16.mxu0 %v1381_v1 }
 0x45f   :  { %870 = vmatpush1.bf16.msra.mxu0 %v1433_v4 }
 0x460   :  { %871 = vmatprep.subr.bf16.mxu0 %v1439_v5 }
 0x461   :  { %1245 = vmatpush3.bf16.msra.mxu1 %v1490_v14 }
 0x462   :  { %1246 = vmatprep.subr.bf16.mxu1 %v1497_v15 }
 0x463   :  { %872 = vmatpush1.bf16.msra.mxu0 %v1445_v6 }
 0x464   :  { %873 = vmatprep.subr.bf16.mxu0 %v1451_v7 }
 0x465   :  { %1247 = vmatpush3.bf16.msra.mxu1 %v1514_v18 }
 0x466   :  { %1248 = vmatprep.subr.bf16.mxu1 %v1521_v19 }
 0x467   :  { %874 = vmatpush1.bf16.msra.mxu0 %v1456_v8 }
 0x468   :  { %875 = vmatprep.subr.bf16.mxu0 %v1461_v9 }
 0x469   :  { %1249 = vmatpush3.bf16.msra.mxu1 %v1538_v22 }
 0x46a   :  { %1250 = vmatprep.subr.bf16.mxu1 %v1545_v23 }
 0x46b   :  { %876 = vmatpush1.bf16.msra.mxu0 %v1478_v12 }
 0x46c   :  { %877 = vmatprep.subr.bf16.mxu0 %v1503_v16 }
 0x46d   :  { %1251 = vmatpush3.bf16.msra.mxu1 %v1557_v25 }
 0x46e   :  { %1252 = vmatprep.subr.bf16.mxu1 %v1572_v28 }
 0x46f   :  { %878 = vmatpush1.bf16.msra.mxu0 %v1508_v17 }
 0x470   :  { %879 = vmatprep.subr.bf16.mxu0 %v1527_v20 }
 0x471   :  { %1253 = vmatpush3.bf16.msra.mxu1 %v1579_v30 }
 0x472   :  { %1254 = vmatprep.subr.bf16.mxu1 %v1586_v31 }
 0x473   :  { %880 = vmatpush1.bf16.msra.mxu0 %v1532_v21 }
 0x474   :  { %881 = vmatprep.subr.bf16.mxu0 %v1551_v24 }
 0x475   :  { %1255 = vmatpush3.bf16.msra.mxu1 %v1611_v32 }
 0x476   :  { %1256 = vmatprep.subr.bf16.mxu1 %v1617_v33 }
 0x477   :  { %882 = vmatpush1.bf16.msra.mxu0 %v1563_v26 }
 0x478   :  { %968 = vmatprep.subr.bf16.mxu0 %v1415_v0 }
 0x479   :  { %1257 = vmatpush3.bf16.msra.mxu1 %v1622_v34 }
 0x47a   :  { %1264 = vmatprep.subr.bf16.mxu1 %v1467_v10 }
 0x52d   :  { %v800_v53 = vpop.f32.mrb[20].mxu0 }
 0x52e   :  { %v807_v54 = vadd.f32 %v1120_v51, %v800_v53  ;;  %v802_v55 = vpop.f32.mrb[21].mxu0 }
 0x52f   :  { %v808_v57 = vadd.f32 %v1121_v52, %v802_v55  ;;  %v1236_v58 = vpop.f32.mrb[16].mxu1  ;;  %v804_v59 = vpop.f32.mrb[22].mxu0 }
 0x530   :  { %v809_v60 = vpack.c.bf16 %v807_v54, %v807_v54  ;;  %1122 = vst [vmem:[%s1976_s5 + $0x50] sm:$0xff] %v807_v54  ;;  %v1237_v0 = vpop.f32.mrb[17].mxu1  ;;  %v805_v62 = vpop.f32.mrb[23].mxu0 }
 0x531   :  { %v810_v63 = vpack.c.bf16 %v808_v57, %v808_v57  ;;  %v1238_v29 = vadd.f32 %v1237_v0, %v1236_v58  ;;  %v1239_v35 = vpop.f32.mrb[18].mxu1 }
 0x532   :  { %v1240_v36 = vpop.f32.mrb[19].mxu1  ;;  %900 = vmatmul.mubr.bf16.vlgmr.msra.gmra.mrb[24].mxu0 %v809_v60 }
 0x533   :  { %843 = vmatprep.mubr.bf16.mxu1 %v810_v63  ;;  %v1868_v37 = vadd.f32 %v1238_v29, %v1681_v56  ;;  %969 = vmatpush1.bf16.msra.mxu0 %v1421_v2  ;;  %v1125_v2 = vld [vmem:[%s1975_s1 + $0x68] sm:$0xff] }
 0x534   :  { %844 = vmatmul.mubr.bf16.vlgmr.msra.gmra.mrb[20].mxu1 %v809_v60  ;;  %970 = vmatprep.subr.bf16.mxu0 %v1427_v3 }
 0x535   :  { %750 = vmax.xlane.f32.xlu0 %v1868_v37  ;;  %1265 = vmatpush3.bf16.msra.mxu1 %v1473_v11 }
 0x536   :  { %1266 = vmatprep.subr.bf16.mxu1 %v1484_v13  ;;  %1000 = vmatprep.mubr.bf16.mxu0 %v1381_v1  ;;  %v1124_v1 = vld [vmem:[%s1975_s1 + $0x60] sm:$0xff] }
 0x537   :  { %971 = vmatpush1.bf16.msra.mxu0 %v1433_v4 }
 0x538   :  { %972 = vmatprep.subr.bf16.mxu0 %v1439_v5 }
 0x539   :  { %1267 = vmatpush3.bf16.msra.mxu1 %v1490_v14 }
 0x53a   :  { %1268 = vmatprep.subr.bf16.mxu1 %v1497_v15 }
 0x53b   :  { %973 = vmatpush1.bf16.msra.mxu0 %v1445_v6 }
 0x53c   :  { %974 = vmatprep.subr.bf16.mxu0 %v1451_v7 }
 0x53d   :  { %1269 = vmatpush3.bf16.msra.mxu1 %v1514_v18 }
 0x53e   :  { %1270 = vmatprep.subr.bf16.mxu1 %v1521_v19 }
 0x53f   :  { %975 = vmatpush1.bf16.msra.mxu0 %v1456_v8 }
 0x540   :  { %976 = vmatprep.subr.bf16.mxu0 %v1461_v9 }
 0x541   :  { %1271 = vmatpush3.bf16.msra.mxu1 %v1538_v22 }
 0x542   :  { %1272 = vmatprep.subr.bf16.mxu1 %v1545_v23 }
 0x543   :  { %977 = vmatpush1.bf16.msra.mxu0 %v1478_v12 }
 0x544   :  { %978 = vmatprep.subr.bf16.mxu0 %v1503_v16 }
 0x545   :  { %1273 = vmatpush3.bf16.msra.mxu1 %v1557_v25 }
 0x546   :  { %1274 = vmatprep.subr.bf16.mxu1 %v1572_v28 }
 0x547   :  { %979 = vmatpush1.bf16.msra.mxu0 %v1508_v17 }
 0x548   :  { %980 = vmatprep.subr.bf16.mxu0 %v1527_v20 }
 0x549   :  { %1275 = vmatpush3.bf16.msra.mxu1 %v1579_v30 }
 0x54a   :  { %1276 = vmatprep.subr.bf16.mxu1 %v1586_v31 }
 0x54b   :  { %981 = vmatpush1.bf16.msra.mxu0 %v1532_v21 }
 0x54c   :  { %982 = vmatprep.subr.bf16.mxu0 %v1551_v24 }
 0x54d   :  { %1277 = vmatpush3.bf16.msra.mxu1 %v1611_v32 }
 0x54e   :  { %1278 = vmatprep.subr.bf16.mxu1 %v1617_v33 }
 0x54f   :  { %983 = vmatpush1.bf16.msra.mxu0 %v1563_v26 }
 0x551   :  { %1279 = vmatpush3.bf16.msra.mxu1 %v1622_v34 }
 0x552   :  { %1286 = vmatprep.subr.bf16.mxu1 %v1467_v10 }
 0x605   :  { %v901_v3 = vpop.f32.mrb[24].mxu0 }
 0x606   :  { %v908_v4 = vadd.f32 %v1124_v1, %v901_v3  ;;  %v903_v5 = vpop.f32.mrb[25].mxu0 }
 0x607   :  { %v909_v6 = vadd.f32 %v1125_v2, %v903_v5  ;;  %v1258_v7 = vpop.f32.mrb[20].mxu1  ;;  %v905_v8 = vpop.f32.mrb[26].mxu0 }
 0x608   :  { %v910_v9 = vpack.c.bf16 %v908_v4, %v908_v4  ;;  %1126 = vst [vmem:[%s1976_s5 + $0x60] sm:$0xff] %v908_v4  ;;  %v1259_v10 = vpop.f32.mrb[21].mxu1  ;;  %v906_v12 = vpop.f32.mrb[27].mxu0 }
 0x609   :  { %v911_v16 = vpack.c.bf16 %v909_v6, %v909_v6  ;;  %v1260_v17 = vadd.f32 %v1259_v10, %v1258_v7  ;;  %v1261_v20 = vpop.f32.mrb[22].mxu1 }
 0x60a   :  { %v1262_v21 = vpop.f32.mrb[23].mxu1  ;;  %1001 = vmatmul.mubr.bf16.vlgmr.msra.gmra.mrb[28].mxu0 %v910_v9 }
 0x60b   :  { %944 = vmatprep.mubr.bf16.mxu1 %v911_v16  ;;  %v1913_v24 = vadd.f32 %v1260_v17, %v1681_v56 }
 0x60c   :  { %945 = vmatmul.mubr.bf16.vlgmr.msra.gmra.mrb[24].mxu1 %v910_v9 }
 0x60d   :  { %851 = vmax.xlane.f32.xlu1 %v1913_v24  ;;  %1287 = vmatpush3.bf16.msra.mxu1 %v1473_v11  ;;  %v348_v11 = vpop.xlane.xlu0 %347 }
 0x60e   :  { %1288 = vmatprep.subr.bf16.mxu1 %v1484_v13  ;;  %v349_v13 = vsub.f32 %v1684_v61, %v348_v11 }
 0x611   :  { %1289 = vmatpush3.bf16.msra.mxu1 %v1490_v14  ;;  %v448_v14 = vpop.xlane.xlu0 %447 }
 0x612   :  { %1290 = vmatprep.subr.bf16.mxu1 %v1497_v15  ;;  %v549_v15 = vpop.xlane.xlu1 %548  ;;  %v449_v1 = vsub.f32 %v1730_v46, %v448_v14 }
 0x614   :  { %v450_v3 = vmul.f32 1.442695, %v449_v1 }
 0x615   :  { %1291 = vmatpush3.bf16.msra.mxu1 %v1514_v18  ;;  %v350_v18 = vmul.f32 1.442695, %v349_v13 }
 0x616   :  { %1292 = vmatprep.subr.bf16.mxu1 %v1521_v19  ;;  %v550_v19 = vsub.f32 %v1776_v27, %v549_v15  ;;  %v650_v2 = vpop.xlane.xlu1 %649 }
 0x617   :  { %1349 = vpow2.f32 %v350_v18  ;;  %v651_v4 = vsub.f32 %v1822_v50, %v650_v2 }
 0x619   :  { %1293 = vmatpush3.bf16.msra.mxu1 %v1538_v22  ;;  %v751_v22 = vpop.xlane.xlu0 %750  ;;  %v652_v6 = vmul.f32 1.442695, %v651_v4 }
 0x61a   :  { %1294 = vmatprep.subr.bf16.mxu1 %v1545_v23  ;;  %v1128_v23 = vld [vmem:[%s1975_s1 + $0x70] sm:$0xff] }
 0x61d   :  { %1295 = vmatpush3.bf16.msra.mxu1 %v1557_v25  ;;  %v1129_v25 = vld [vmem:[%s1975_s1 + $0x78] sm:$0xff] }
 0x61e   :  { %1296 = vmatprep.subr.bf16.mxu1 %v1572_v28  ;;  %v551_v28 = vmul.f32 1.442695, %v550_v19 }
 0x620   :  { %1351 = vpow2.f32 %v551_v28 }
 0x621   :  { %1297 = vmatpush3.bf16.msra.mxu1 %v1579_v30  ;;  %v752_v30 = vsub.f32 %v1868_v37, %v751_v22  ;;  %v1350_v47 = vpop.eup %1349 }
 0x622   :  { %1298 = vmatprep.subr.bf16.mxu1 %v1586_v31 }
 0x623   :  { %v753_v42 = vmul.f32 1.442695, %v752_v30 }
 0x625   :  { %1299 = vmatpush3.bf16.msra.mxu1 %v1611_v32  ;;  %1353 = vpow2.f32 %v753_v42 }
 0x626   :  { %1300 = vmatprep.subr.bf16.mxu1 %v1617_v33 }
 0x629   :  { %1301 = vmatpush3.bf16.msra.mxu1 %v1622_v34 }
 0x62a   :  { %v1352_v48 = vpop.eup %1351 }
 0x62f   :  { %v1354_v49 = vpop.eup %1353 }
 0x69a   :  { %v852_v5 = vpop.xlane.xlu1 %851 }
 0x69b   :  { %v853_v7 = vsub.f32 %v1913_v24, %v852_v5 }
 0x69d   :  { %v854_v16 = vmul.f32 1.442695, %v853_v7 }
 0x6dd   :  { %v1002_v26 = vpop.f32.mrb[28].mxu0 }
 0x6de   :  { %v1009_v31 = vadd.f32 %v1128_v23, %v1002_v26  ;;  %v1004_v32 = vpop.f32.mrb[29].mxu0 }
 0x6df   :  { %v1010_v33 = vadd.f32 %v1129_v25, %v1004_v32  ;;  %v1280_v34 = vpop.f32.mrb[24].mxu1  ;;  %v1006_v61 = vpop.f32.mrb[30].mxu0 }
 0x6e0   :  { %1130 = vst [vmem:[%s1976_s5 + $0x70] sm:$0xff] %v1009_v31  ;;  %v1281_v27 = vpop.f32.mrb[25].mxu1  ;;  %v1007_v38 = vpop.f32.mrb[31].mxu0  ;;  %v1011_v43 = vpack.c.bf16 %v1009_v31, %v1009_v31 }
 0x6e1   :  { %v1012_v39 = vpack.c.bf16 %v1010_v33, %v1010_v33  ;;  %v1282_v40 = vadd.f32 %v1281_v27, %v1280_v34  ;;  %v1283_v41 = vpop.f32.mrb[26].mxu1 }
 0x6e2   :  { %v1284_v44 = vpop.f32.mrb[27].mxu1 }
 0x6e3   :  { %1045 = vmatprep.mubr.bf16.mxu1 %v1012_v39  ;;  %v947_v45 = vadd.f32 %v1282_v40, %v1681_v56 }
 0x6e4   :  { %1046 = vmatmul.mubr.bf16.vlgmr.msra.gmra.mrb[28].mxu1 %v1011_v43 }
 0x6e5   :  { %952 = vmax.xlane.f32.xlu0 %v947_v45 }
 0x6e9   :  { %352 = vadd.xlane.f32.xlu0 %v1350_v47 }
 0x6ed   :  { %553 = vadd.xlane.f32.xlu0 %v1352_v48 }
 0x6f1   :  { %755 = vadd.xlane.f32.xlu0 %v1354_v49 }
 0x772   :  { %v953_v51 = vpop.xlane.xlu0 %952 }
 0x773   :  { %v954_v52 = vsub.f32 %v947_v45, %v953_v51 }
 0x775   :  { %v955_v53 = vmul.f32 1.442695, %v954_v52 }
 0x776   :  { %v353_v54 = vpop.xlane.xlu0 %352 }
 0x777   :  { %1355 = vpow2.f32 %v955_v53 }
 0x778   :  { %1357 = vlog2.f32 %v353_v54 }
 0x77a   :  { %v554_v55 = vpop.xlane.xlu0 %553 }
 0x77b   :  { %1359 = vlog2.f32 %v554_v55 }
 0x77e   :  { %v756_v57 = vpop.xlane.xlu0 %755 }
 0x77f   :  { %1361 = vlog2.f32 %v756_v57 }
 0x780   :  { %1363 = vpow2.f32 %v450_v3 }
 0x781   :  { %v1356_v58 = vpop.eup %1355  ;;  %1365 = vpow2.f32 %v652_v6 }
 0x782   :  { %v1358_v59 = vpop.eup %1357  ;;  %957 = vadd.xlane.f32.xlu0 %v1356_v58  ;;  %1367 = vpow2.f32 %v854_v16 }
 0x783   :  { %v355_v60 = vmul.f32 0.6931472, %v1358_v59 }
 0x785   :  { %v1360_v0 = vpop.eup %1359  ;;  %v356_v62 = vsub.f32 %v349_v13, %v355_v60 }
 0x786   :  { %v556_v63 = vmul.f32 0.6931472, %v1360_v0 }
 0x787   :  { %358 = vst [vmem:[%s1976_s5 + $0x8] sm:$0xff] %v356_v62 }
 0x788   :  { %v557_v29 = vsub.f32 %v550_v19, %v556_v63 }
 0x789   :  { %v1362_v35 = vpop.eup %1361 }
 0x78a   :  { %1111 = vst [vmem:[%s1976_s5 + $0x28] sm:$0xff] %v557_v29  ;;  %v758_v36 = vmul.f32 0.6931472, %v1362_v35  ;;  %v1364_v46 = vpop.eup %1363 }
 0x78b   :  { %v1366_v21 = vpop.eup %1365 }
 0x78c   :  { %v759_v37 = vsub.f32 %v752_v30, %v758_v36  ;;  %v1368_v50 = vpop.eup %1367 }
 0x78e   :  { %1119 = vst [vmem:[%s1976_s5 + $0x48] sm:$0xff] %v759_v37 }
 0x7b7   :  { %v1302_v8 = vpop.f32.mrb[28].mxu1 }
 0x7b8   :  { %v1303_v9 = vpop.f32.mrb[29].mxu1 }
 0x7b9   :  { %v1304_v10 = vadd.f32 %v1303_v9, %v1302_v8  ;;  %v1305_v12 = vpop.f32.mrb[30].mxu1 }
 0x7ba   :  { %v1306_v17 = vpop.f32.mrb[31].mxu1 }
 0x7bb   :  { %v1048_v20 = vadd.f32 %v1304_v10, %v1681_v56 }
 0x7bd   :  { %1053 = vmax.xlane.f32.xlu1 %v1048_v20 }
 0x7c1   :  { %452 = vadd.xlane.f32.xlu1 %v1364_v46 }
 0x7c5   :  { %654 = vadd.xlane.f32.xlu1 %v1366_v21 }
 0x7c9   :  { %856 = vadd.xlane.f32.xlu1 %v1368_v50 }
 0x80f   :  { %v958_v11 = vpop.xlane.xlu0 %957 }
 0x810   :  { %1369 = vlog2.f32 %v958_v11 }
 0x81a   :  { %v1370_v24 = vpop.eup %1369 }
 0x81b   :  { %v960_v13 = vmul.f32 0.6931472, %v1370_v24 }
 0x81d   :  { %v961_v14 = vsub.f32 %v954_v52, %v960_v13 }
 0x81f   :  { %1127 = vst [vmem:[%s1976_s5 + $0x68] sm:$0xff] %v961_v14 }
 0x84a   :  { %v1054_v15 = vpop.xlane.xlu1 %1053 }
 0x84b   :  { %v1055_v18 = vsub.f32 %v1048_v20, %v1054_v15 }
 0x84d   :  { %v1056_v56 = vmul.f32 1.442695, %v1055_v18 }
 0x84e   :  { %v453_v19 = vpop.xlane.xlu1 %452 }
 0x84f   :  { %1371 = vpow2.f32 %v1056_v56 }
 0x850   :  { %1373 = vlog2.f32 %v453_v19 }
 0x852   :  { %v655_v22 = vpop.xlane.xlu1 %654 }
 0x853   :  { %1375 = vlog2.f32 %v655_v22 }
 0x856   :  { %v857_v23 = vpop.xlane.xlu1 %856 }
 0x857   :  { %1377 = vlog2.f32 %v857_v23 }
 0x859   :  { %v1372_v25 = vpop.eup %1371 }
 0x85a   :  { %v1374_v26 = vpop.eup %1373  ;;  %1058 = vadd.xlane.f32.xlu1 %v1372_v25 }
 0x85b   :  { %v455_v28 = vmul.f32 0.6931472, %v1374_v26 }
 0x85d   :  { %v1376_v30 = vpop.eup %1375  ;;  %v456_v31 = vsub.f32 %v449_v1, %v455_v28 }
 0x85e   :  { %v657_v32 = vmul.f32 0.6931472, %v1376_v30 }
 0x85f   :  { %1107 = vst [vmem:[%s1976_s5 + $0x18] sm:$0xff] %v456_v31 }
 0x860   :  { %v658_v33 = vsub.f32 %v651_v4, %v657_v32 }
 0x861   :  { %v1378_v34 = vpop.eup %1377 }
 0x862   :  { %1115 = vst [vmem:[%s1976_s5 + $0x38] sm:$0xff] %v658_v33  ;;  %v859_v61 = vmul.f32 0.6931472, %v1378_v34 }
 0x864   :  { %v860_v27 = vsub.f32 %v853_v7, %v859_v61 }
 0x866   :  { %1123 = vst [vmem:[%s1976_s5 + $0x58] sm:$0xff] %v860_v27 }
 0x8e7   :  { %v1059_v38 = vpop.xlane.xlu1 %1058 }
 0x8e8   :  { %1379 = vlog2.f32 %v1059_v38 }
 0x8f2   :  { %v1380_v39 = vpop.eup %1379 }
 0x8f3   :  { %v1061_v40 = vmul.f32 0.6931472, %v1380_v39 }
 0x8f5   :  { %v1062_v41 = vsub.f32 %v1055_v18, %v1061_v40 }
 0x8f7   :  { %1131 = vst [vmem:[%s1976_s5 + $0x78] sm:$0xff] %v1062_v41 }

</bundles_post_ra>
